<compile_context>
chip_gen: v7x
topology: tpu7x:2x2x1
jax: 0.10.0
libtpu: 0.0.40
codegen_flags: <defaults>
</compile_context>

<pallas_src>
import functools

import jax
import jax.numpy as jnp
from jax.experimental import pallas as pl
from jax.experimental.pallas import tpu as pltpu


def _space_to_depth_kernel(p_ref, x_ref, o_ref, *, tc, bs, w, wo):
    """One grid step = one (batch element, channel tile).

    p_ref: (W, W)                  constant 0/1 lane-gather matrix (b2 de-interleave)
    x_ref: (1, TC, Ho, bs*W)       input rows, 4-row group (b1) folded into lanes
    o_ref: (1, bs*bs, TC, Ho, Wo)  output planes, group index g = b1*bs + b2
    """
    p = p_ref[...]                                  # hoisted: loaded once per step
    for c in range(tc):                             # static unroll (tc kept small)
        mrow = x_ref[0, c]                          # (Ho, bs*W): one load per channel
        for b1 in range(bs):                        # static, bs == 4
            # lanes [b1*W, (b1+1)*W) hold input rows 4*ho + b1
            m = mrow[:, b1 * w:(b1 + 1) * w].astype(p.dtype)
            # one MXU pass gathers every 4th lane for all b2 at once:
            # r columns are ordered [b2=0 | b2=1 | b2=2 | b2=3], each Wo wide.
            r = jnp.dot(m, p, preferred_element_type=jnp.float32).astype(o_ref.dtype)
            for b2 in range(bs):                    # static, 4
                o_ref[0, b1 * bs + b2, c] = r[:, b2 * wo:(b2 + 1) * wo]


def space_to_depth(x, block_size=4, *, c_tile=8):
    assert block_size == 4, "module asserts block_size == 4"
    bs = block_size
    n, c, h, w = x.shape
    assert h % bs == 0 and w % bs == 0, "H and W must be divisible by block_size"
    ho, wo = h // bs, w // bs
    n_groups = bs * bs

    # Channel tile: largest divisor of C that is <= c_tile and keeps the
    # (double-buffered) input+output blocks comfortably inside VMEM.
    itemsize = jnp.dtype(x.dtype).itemsize
    vmem_budget = 16 * 1024 * 1024
    tc = 1
    for t in range(min(c, c_tile), 0, -1):
        if c % t == 0 and 4 * t * h * w * itemsize <= vmem_budget:
            tc = t
            break

    # FREE reshape: (N, C, H, W) -> (N, C, Ho, bs*W).
    # Lane index l = b1*W + w0 corresponds to input element (4*ho + b1, w0).
    x2 = x.reshape(n, c, ho, bs * w)

    # 0/1 lane-gather matrix, built once in the wrapper (never per grid step).
    # Column k = b2*Wo + j selects source lane bs*j + b2.
    if x.dtype in (jnp.bfloat16, jnp.float32):
        pdtype = x.dtype                              # native MXU path, no up-cast
    else:
        # TODO(synk): integer inputs go through the f32 MXU path; exact only for
        # |x| < 2**24 (v7x's MXU has no integer mode at all).
        pdtype = jnp.float32
    col = jnp.arange(w, dtype=jnp.int32)
    src = bs * (col % wo) + (col // wo)               # (W,)
    rows = jnp.arange(w, dtype=jnp.int32)
    pmat = (rows[:, None] == src[None, :]).astype(pdtype)   # (W, W)

    kernel = functools.partial(_space_to_depth_kernel, tc=tc, bs=bs, w=w, wo=wo)

    out = pl.pallas_call(
        kernel,
        out_shape=jax.ShapeDtypeStruct((n, n_groups, c, ho, wo), x.dtype),
        grid_spec=pltpu.PrefetchScalarGridSpec(
            num_scalar_prefetch=0,
            grid=(n, c // tc),
            in_specs=[
                # constant gather matrix: same block every step -> fetched once
                pl.BlockSpec((w, w), lambda i, j: (0, 0)),
                pl.BlockSpec((1, tc, ho, bs * w), lambda i, j: (i, j, 0, 0)),
            ],
            out_specs=pl.BlockSpec((1, n_groups, tc, ho, wo),
                                   lambda i, j: (i, 0, j, 0, 0)),
        ),
        compiler_params=pltpu.CompilerParams(
            dimension_semantics=("parallel", "parallel")),
    )(pmat, x2)

    # FREE reshape: (N, 16, C, Ho, Wo) -> (N, 16*C, Ho, Wo); channel index is
    # (b1*4 + b2)*C + c, exactly matching the PyTorch permute + view.
    return out.reshape(n, n_groups * c, ho, wo)


def space_to_depth_ref(x, bs):
    # Pure-JAX reference mirroring the PyTorch forward exactly.
    n, c, h, w = x.shape
    y = x.reshape(n, c, h // bs, bs, w // bs, bs)
    y = jnp.transpose(y, (0, 3, 5, 1, 2, 4))
    return y.reshape(n, c * bs * bs, h // bs, w // bs)


if __name__ == "__main__":
    key = jax.random.PRNGKey(0)
    N, C, H, W = 2, 4, 16, 16
    BS = 4  # block_size, asserted == 4 by the module
    x = jax.random.normal(key, (N, C, H, W), dtype=jnp.float32)

    out = space_to_depth(x, BS)
    out = jax.block_until_ready(out)

    ref = space_to_depth_ref(x, BS)
    assert out.shape == (N, C * BS * BS, H // BS, W // BS), out.shape
    assert out.dtype == x.dtype
    assert jnp.allclose(out, ref, atol=1e-5, rtol=1e-5), "mismatch vs reference"
    print("KERNEL_OK")
</pallas_src>

<mosaic_0001>
module attributes {stable_mosaic.version = 11 : i64} {
  func.func @_space_to_depth_kernel(%arg0: i32, %arg1: i32, %arg2: memref<16x16xf32, #tpu.memory_space<vmem>>, %arg3: memref<1x4x4x64xf32, #tpu.memory_space<vmem>>, %arg4: memref<1x16x4x4x4xf32, #tpu.memory_space<vmem>>) attributes {dimension_semantics = [#tpu.dimension_semantics<parallel>, #tpu.dimension_semantics<parallel>], iteration_bounds = array<i64: 2, 1>, scalar_prefetch = 0 : i64, scratch_operands = 0 : i64, tpu.core_type = #tpu.core_type<tc>, window_params = [{pipeline_mode = #tpu.pipeline_mode<synchronous>, transform_indices = @transform_0, window_bounds = array<i64: 16, 16>}, {transform_indices = @transform_1, window_bounds = array<i64: 1, 4, 4, 64>}, {transform_indices = @transform_2, window_bounds = array<i64: 1, 16, 4, 4, 4>}]} {
    %c0 = arith.constant 0 : index
    %c0_0 = arith.constant 0 : index
    %0 = vector.load %arg2[%c0, %c0_0] : memref<16x16xf32, #tpu.memory_space<vmem>>, vector<16x16xf32>
    %c0_1 = arith.constant 0 : index
    %c0_2 = arith.constant 0 : index
    %c0_3 = arith.constant 0 : index
    %c0_4 = arith.constant 0 : index
    %1 = vector.load %arg3[%c0_1, %c0_2, %c0_3, %c0_4] : memref<1x4x4x64xf32, #tpu.memory_space<vmem>>, vector<1x1x4x64xf32>
    %2 = vector.shape_cast %1 : vector<1x1x4x64xf32> to vector<4x64xf32>
    %3 = vector.extract_strided_slice %2 {offsets = [0, 0], sizes = [4, 16], strides = [1, 1]} : vector<4x64xf32> to vector<4x16xf32>
    %cst = arith.constant dense<0.000000e+00> : vector<4x16xf32>
    %4 = tpu.matmul %3, %0, %cst {dimension_numbers = #tpu.dot_dimension_numbers<[1], [0], [0], [1], [0, 0, 1, 1], [], []>} : vector<4x16xf32>, vector<16x16xf32>, vector<4x16xf32> -> vector<4x16xf32>
    %5 = vector.extract_strided_slice %4 {offsets = [0, 0], sizes = [4, 4], strides = [1, 1]} : vector<4x16xf32> to vector<4x4xf32>
    %c0_5 = arith.constant 0 : index
    %c0_6 = arith.constant 0 : index
    %c0_7 = arith.constant 0 : index
    %c0_8 = arith.constant 0 : index
    %c0_9 = arith.constant 0 : index
    %6 = vector.load %arg4[%c0_5, %c0_6, %c0_7, %c0_8, %c0_9] : memref<1x16x4x4x4xf32, #tpu.memory_space<vmem>>, vector<1x1x1x4x4xf32>
    %7 = vector.shape_cast %6 : vector<1x1x1x4x4xf32> to vector<4x4xf32>
    %8 = vector.shape_cast %5 : vector<4x4xf32> to vector<1x1x1x4x4xf32>
    tpu.vector_store %arg4[%c0_5, %c0_6, %c0_7, %c0_8, %c0_9], %8 {strides = array<i32>} : memref<1x16x4x4x4xf32, #tpu.memory_space<vmem>>, vector<1x1x1x4x4xf32>,
    %9 = vector.extract_strided_slice %4 {offsets = [0, 4], sizes = [4, 4], strides = [1, 1]} : vector<4x16xf32> to vector<4x4xf32>
    %c0_10 = arith.constant 0 : index
    %c1 = arith.constant 1 : index
    %c0_11 = arith.constant 0 : index
    %c0_12 = arith.constant 0 : index
    %c0_13 = arith.constant 0 : index
    %10 = vector.load %arg4[%c0_10, %c1, %c0_11, %c0_12, %c0_13] : memref<1x16x4x4x4xf32, #tpu.memory_space<vmem>>, vector<1x1x1x4x4xf32>
    %11 = vector.shape_cast %10 : vector<1x1x1x4x4xf32> to vector<4x4xf32>
    %12 = vector.shape_cast %9 : vector<4x4xf32> to vector<1x1x1x4x4xf32>
    tpu.vector_store %arg4[%c0_10, %c1, %c0_11, %c0_12, %c0_13], %12 {strides = array<i32>} : memref<1x16x4x4x4xf32, #tpu.memory_space<vmem>>, vector<1x1x1x4x4xf32>,
    %13 = vector.extract_strided_slice %4 {offsets = [0, 8], sizes = [4, 4], strides = [1, 1]} : vector<4x16xf32> to vector<4x4xf32>
    %c0_14 = arith.constant 0 : index
    %c2 = arith.constant 2 : index
    %c0_15 = arith.constant 0 : index
    %c0_16 = arith.constant 0 : index
    %c0_17 = arith.constant 0 : index
    %14 = vector.load %arg4[%c0_14, %c2, %c0_15, %c0_16, %c0_17] : memref<1x16x4x4x4xf32, #tpu.memory_space<vmem>>, vector<1x1x1x4x4xf32>
    %15 = vector.shape_cast %14 : vector<1x1x1x4x4xf32> to vector<4x4xf32>
    %16 = vector.shape_cast %13 : vector<4x4xf32> to vector<1x1x1x4x4xf32>
    tpu.vector_store %arg4[%c0_14, %c2, %c0_15, %c0_16, %c0_17], %16 {strides = array<i32>} : memref<1x16x4x4x4xf32, #tpu.memory_space<vmem>>, vector<1x1x1x4x4xf32>,
    %17 = vector.extract_strided_slice %4 {offsets = [0, 12], sizes = [4, 4], strides = [1, 1]} : vector<4x16xf32> to vector<4x4xf32>
    %c0_18 = arith.constant 0 : index
    %c3 = arith.constant 3 : index
    %c0_19 = arith.constant 0 : index
    %c0_20 = arith.constant 0 : index
    %c0_21 = arith.constant 0 : index
    %18 = vector.load %arg4[%c0_18, %c3, %c0_19, %c0_20, %c0_21] : memref<1x16x4x4x4xf32, #tpu.memory_space<vmem>>, vector<1x1x1x4x4xf32>
    %19 = vector.shape_cast %18 : vector<1x1x1x4x4xf32> to vector<4x4xf32>
    %20 = vector.shape_cast %17 : vector<4x4xf32> to vector<1x1x1x4x4xf32>
    tpu.vector_store %arg4[%c0_18, %c3, %c0_19, %c0_20, %c0_21], %20 {strides = array<i32>} : memref<1x16x4x4x4xf32, #tpu.memory_space<vmem>>, vector<1x1x1x4x4xf32>,
    %21 = vector.extract_strided_slice %2 {offsets = [0, 16], sizes = [4, 16], strides = [1, 1]} : vector<4x64xf32> to vector<4x16xf32>
    %cst_22 = arith.constant dense<0.000000e+00> : vector<4x16xf32>
    %22 = tpu.matmul %21, %0, %cst_22 {dimension_numbers = #tpu.dot_dimension_numbers<[1], [0], [0], [1], [0, 0, 1, 1], [], []>} : vector<4x16xf32>, vector<16x16xf32>, vector<4x16xf32> -> vector<4x16xf32>
    %23 = vector.extract_strided_slice %22 {offsets = [0, 0], sizes = [4, 4], strides = [1, 1]} : vector<4x16xf32> to vector<4x4xf32>
    %c0_23 = arith.constant 0 : index
    %c4 = arith.constant 4 : index
    %c0_24 = arith.constant 0 : index
    %c0_25 = arith.constant 0 : index
    %c0_26 = arith.constant 0 : index
    %24 = vector.load %arg4[%c0_23, %c4, %c0_24, %c0_25, %c0_26] : memref<1x16x4x4x4xf32, #tpu.memory_space<vmem>>, vector<1x1x1x4x4xf32>
    %25 = vector.shape_cast %24 : vector<1x1x1x4x4xf32> to vector<4x4xf32>
    %26 = vector.shape_cast %23 : vector<4x4xf32> to vector<1x1x1x4x4xf32>
    tpu.vector_store %arg4[%c0_23, %c4, %c0_24, %c0_25, %c0_26], %26 {strides = array<i32>} : memref<1x16x4x4x4xf32, #tpu.memory_space<vmem>>, vector<1x1x1x4x4xf32>,
    %27 = vector.extract_strided_slice %22 {offsets = [0, 4], sizes = [4, 4], strides = [1, 1]} : vector<4x16xf32> to vector<4x4xf32>
    %c0_27 = arith.constant 0 : index
    %c5 = arith.constant 5 : index
    %c0_28 = arith.constant 0 : index
    %c0_29 = arith.constant 0 : index
    %c0_30 = arith.constant 0 : index
    %28 = vector.load %arg4[%c0_27, %c5, %c0_28, %c0_29, %c0_30] : memref<1x16x4x4x4xf32, #tpu.memory_space<vmem>>, vector<1x1x1x4x4xf32>
    %29 = vector.shape_cast %28 : vector<1x1x1x4x4xf32> to vector<4x4xf32>
    %30 = vector.shape_cast %27 : vector<4x4xf32> to vector<1x1x1x4x4xf32>
    tpu.vector_store %arg4[%c0_27, %c5, %c0_28, %c0_29, %c0_30], %30 {strides = array<i32>} : memref<1x16x4x4x4xf32, #tpu.memory_space<vmem>>, vector<1x1x1x4x4xf32>,
    %31 = vector.extract_strided_slice %22 {offsets = [0, 8], sizes = [4, 4], strides = [1, 1]} : vector<4x16xf32> to vector<4x4xf32>
    %c0_31 = arith.constant 0 : index
    %c6 = arith.constant 6 : index
    %c0_32 = arith.constant 0 : index
    %c0_33 = arith.constant 0 : index
    %c0_34 = arith.constant 0 : index
    %32 = vector.load %arg4[%c0_31, %c6, %c0_32, %c0_33, %c0_34] : memref<1x16x4x4x4xf32, #tpu.memory_space<vmem>>, vector<1x1x1x4x4xf32>
    %33 = vector.shape_cast %32 : vector<1x1x1x4x4xf32> to vector<4x4xf32>
    %34 = vector.shape_cast %31 : vector<4x4xf32> to vector<1x1x1x4x4xf32>
    tpu.vector_store %arg4[%c0_31, %c6, %c0_32, %c0_33, %c0_34], %34 {strides = array<i32>} : memref<1x16x4x4x4xf32, #tpu.memory_space<vmem>>, vector<1x1x1x4x4xf32>,
    %35 = vector.extract_strided_slice %22 {offsets = [0, 12], sizes = [4, 4], strides = [1, 1]} : vector<4x16xf32> to vector<4x4xf32>
    %c0_35 = arith.constant 0 : index
    %c7 = arith.constant 7 : index
    %c0_36 = arith.constant 0 : index
    %c0_37 = arith.constant 0 : index
    %c0_38 = arith.constant 0 : index
    %36 = vector.load %arg4[%c0_35, %c7, %c0_36, %c0_37, %c0_38] : memref<1x16x4x4x4xf32, #tpu.memory_space<vmem>>, vector<1x1x1x4x4xf32>
    %37 = vector.shape_cast %36 : vector<1x1x1x4x4xf32> to vector<4x4xf32>
    %38 = vector.shape_cast %35 : vector<4x4xf32> to vector<1x1x1x4x4xf32>
    tpu.vector_store %arg4[%c0_35, %c7, %c0_36, %c0_37, %c0_38], %38 {strides = array<i32>} : memref<1x16x4x4x4xf32, #tpu.memory_space<vmem>>, vector<1x1x1x4x4xf32>,
    %39 = vector.extract_strided_slice %2 {offsets = [0, 32], sizes = [4, 16], strides = [1, 1]} : vector<4x64xf32> to vector<4x16xf32>
    %cst_39 = arith.constant dense<0.000000e+00> : vector<4x16xf32>
    %40 = tpu.matmul %39, %0, %cst_39 {dimension_numbers = #tpu.dot_dimension_numbers<[1], [0], [0], [1], [0, 0, 1, 1], [], []>} : vector<4x16xf32>, vector<16x16xf32>, vector<4x16xf32> -> vector<4x16xf32>
    %41 = vector.extract_strided_slice %40 {offsets = [0, 0], sizes = [4, 4], strides = [1, 1]} : vector<4x16xf32> to vector<4x4xf32>
    %c0_40 = arith.constant 0 : index
    %c8 = arith.constant 8 : index
    %c0_41 = arith.constant 0 : index
    %c0_42 = arith.constant 0 : index
    %c0_43 = arith.constant 0 : index
    %42 = vector.load %arg4[%c0_40, %c8, %c0_41, %c0_42, %c0_43] : memref<1x16x4x4x4xf32, #tpu.memory_space<vmem>>, vector<1x1x1x4x4xf32>
    %43 = vector.shape_cast %42 : vector<1x1x1x4x4xf32> to vector<4x4xf32>
    %44 = vector.shape_cast %41 : vector<4x4xf32> to vector<1x1x1x4x4xf32>
    tpu.vector_store %arg4[%c0_40, %c8, %c0_41, %c0_42, %c0_43], %44 {strides = array<i32>} : memref<1x16x4x4x4xf32, #tpu.memory_space<vmem>>, vector<1x1x1x4x4xf32>,
    %45 = vector.extract_strided_slice %40 {offsets = [0, 4], sizes = [4, 4], strides = [1, 1]} : vector<4x16xf32> to vector<4x4xf32>
    %c0_44 = arith.constant 0 : index
    %c9 = arith.constant 9 : index
    %c0_45 = arith.constant 0 : index
    %c0_46 = arith.constant 0 : index
    %c0_47 = arith.constant 0 : index
    %46 = vector.load %arg4[%c0_44, %c9, %c0_45, %c0_46, %c0_47] : memref<1x16x4x4x4xf32, #tpu.memory_space<vmem>>, vector<1x1x1x4x4xf32>
    %47 = vector.shape_cast %46 : vector<1x1x1x4x4xf32> to vector<4x4xf32>
    %48 = vector.shape_cast %45 : vector<4x4xf32> to vector<1x1x1x4x4xf32>
    tpu.vector_store %arg4[%c0_44, %c9, %c0_45, %c0_46, %c0_47], %48 {strides = array<i32>} : memref<1x16x4x4x4xf32, #tpu.memory_space<vmem>>, vector<1x1x1x4x4xf32>,
    %49 = vector.extract_strided_slice %40 {offsets = [0, 8], sizes = [4, 4], strides = [1, 1]} : vector<4x16xf32> to vector<4x4xf32>
    %c0_48 = arith.constant 0 : index
    %c10 = arith.constant 10 : index
    %c0_49 = arith.constant 0 : index
    %c0_50 = arith.constant 0 : index
    %c0_51 = arith.constant 0 : index
    %50 = vector.load %arg4[%c0_48, %c10, %c0_49, %c0_50, %c0_51] : memref<1x16x4x4x4xf32, #tpu.memory_space<vmem>>, vector<1x1x1x4x4xf32>
    %51 = vector.shape_cast %50 : vector<1x1x1x4x4xf32> to vector<4x4xf32>
    %52 = vector.shape_cast %49 : vector<4x4xf32> to vector<1x1x1x4x4xf32>
    tpu.vector_store %arg4[%c0_48, %c10, %c0_49, %c0_50, %c0_51], %52 {strides = array<i32>} : memref<1x16x4x4x4xf32, #tpu.memory_space<vmem>>, vector<1x1x1x4x4xf32>,
    %53 = vector.extract_strided_slice %40 {offsets = [0, 12], sizes = [4, 4], strides = [1, 1]} : vector<4x16xf32> to vector<4x4xf32>
    %c0_52 = arith.constant 0 : index
    %c11 = arith.constant 11 : index
    %c0_53 = arith.constant 0 : index
    %c0_54 = arith.constant 0 : index
    %c0_55 = arith.constant 0 : index
    %54 = vector.load %arg4[%c0_52, %c11, %c0_53, %c0_54, %c0_55] : memref<1x16x4x4x4xf32, #tpu.memory_space<vmem>>, vector<1x1x1x4x4xf32>
    %55 = vector.shape_cast %54 : vector<1x1x1x4x4xf32> to vector<4x4xf32>
    %56 = vector.shape_cast %53 : vector<4x4xf32> to vector<1x1x1x4x4xf32>
    tpu.vector_store %arg4[%c0_52, %c11, %c0_53, %c0_54, %c0_55], %56 {strides = array<i32>} : memref<1x16x4x4x4xf32, #tpu.memory_space<vmem>>, vector<1x1x1x4x4xf32>,
    %57 = vector.extract_strided_slice %2 {offsets = [0, 48], sizes = [4, 16], strides = [1, 1]} : vector<4x64xf32> to vector<4x16xf32>
    %cst_56 = arith.constant dense<0.000000e+00> : vector<4x16xf32>
    %58 = tpu.matmul %57, %0, %cst_56 {dimension_numbers = #tpu.dot_dimension_numbers<[1], [0], [0], [1], [0, 0, 1, 1], [], []>} : vector<4x16xf32>, vector<16x16xf32>, vector<4x16xf32> -> vector<4x16xf32>
    %59 = vector.extract_strided_slice %58 {offsets = [0, 0], sizes = [4, 4], strides = [1, 1]} : vector<4x16xf32> to vector<4x4xf32>
    %c0_57 = arith.constant 0 : index
    %c12 = arith.constant 12 : index
    %c0_58 = arith.constant 0 : index
    %c0_59 = arith.constant 0 : index
    %c0_60 = arith.constant 0 : index
    %60 = vector.load %arg4[%c0_57, %c12, %c0_58, %c0_59, %c0_60] : memref<1x16x4x4x4xf32, #tpu.memory_space<vmem>>, vector<1x1x1x4x4xf32>
    %61 = vector.shape_cast %60 : vector<1x1x1x4x4xf32> to vector<4x4xf32>
    %62 = vector.shape_cast %59 : vector<4x4xf32> to vector<1x1x1x4x4xf32>
    tpu.vector_store %arg4[%c0_57, %c12, %c0_58, %c0_59, %c0_60], %62 {strides = array<i32>} : memref<1x16x4x4x4xf32, #tpu.memory_space<vmem>>, vector<1x1x1x4x4xf32>,
    %63 = vector.extract_strided_slice %58 {offsets = [0, 4], sizes = [4, 4], strides = [1, 1]} : vector<4x16xf32> to vector<4x4xf32>
    %c0_61 = arith.constant 0 : index
    %c13 = arith.constant 13 : index
    %c0_62 = arith.constant 0 : index
    %c0_63 = arith.constant 0 : index
    %c0_64 = arith.constant 0 : index
    %64 = vector.load %arg4[%c0_61, %c13, %c0_62, %c0_63, %c0_64] : memref<1x16x4x4x4xf32, #tpu.memory_space<vmem>>, vector<1x1x1x4x4xf32>
    %65 = vector.shape_cast %64 : vector<1x1x1x4x4xf32> to vector<4x4xf32>
    %66 = vector.shape_cast %63 : vector<4x4xf32> to vector<1x1x1x4x4xf32>
    tpu.vector_store %arg4[%c0_61, %c13, %c0_62, %c0_63, %c0_64], %66 {strides = array<i32>} : memref<1x16x4x4x4xf32, #tpu.memory_space<vmem>>, vector<1x1x1x4x4xf32>,
    %67 = vector.extract_strided_slice %58 {offsets = [0, 8], sizes = [4, 4], strides = [1, 1]} : vector<4x16xf32> to vector<4x4xf32>
    %c0_65 = arith.constant 0 : index
    %c14 = arith.constant 14 : index
    %c0_66 = arith.constant 0 : index
    %c0_67 = arith.constant 0 : index
    %c0_68 = arith.constant 0 : index
    %68 = vector.load %arg4[%c0_65, %c14, %c0_66, %c0_67, %c0_68] : memref<1x16x4x4x4xf32, #tpu.memory_space<vmem>>, vector<1x1x1x4x4xf32>
    %69 = vector.shape_cast %68 : vector<1x1x1x4x4xf32> to vector<4x4xf32>
    %70 = vector.shape_cast %67 : vector<4x4xf32> to vector<1x1x1x4x4xf32>
    tpu.vector_store %arg4[%c0_65, %c14, %c0_66, %c0_67, %c0_68], %70 {strides = array<i32>} : memref<1x16x4x4x4xf32, #tpu.memory_space<vmem>>, vector<1x1x1x4x4xf32>,
    %71 = vector.extract_strided_slice %58 {offsets = [0, 12], sizes = [4, 4], strides = [1, 1]} : vector<4x16xf32> to vector<4x4xf32>
    %c0_69 = arith.constant 0 : index
    %c15 = arith.constant 15 : index
    %c0_70 = arith.constant 0 : index
    %c0_71 = arith.constant 0 : index
    %c0_72 = arith.constant 0 : index
    %72 = vector.load %arg4[%c0_69, %c15, %c0_70, %c0_71, %c0_72] : memref<1x16x4x4x4xf32, #tpu.memory_space<vmem>>, vector<1x1x1x4x4xf32>
    %73 = vector.shape_cast %72 : vector<1x1x1x4x4xf32> to vector<4x4xf32>
    %74 = vector.shape_cast %71 : vector<4x4xf32> to vector<1x1x1x4x4xf32>
    tpu.vector_store %arg4[%c0_69, %c15, %c0_70, %c0_71, %c0_72], %74 {strides = array<i32>} : memref<1x16x4x4x4xf32, #tpu.memory_space<vmem>>, vector<1x1x1x4x4xf32>,
    %c0_73 = arith.constant 0 : index
    %c1_74 = arith.constant 1 : index
    %c0_75 = arith.constant 0 : index
    %c0_76 = arith.constant 0 : index
    %75 = vector.load %arg3[%c0_73, %c1_74, %c0_75, %c0_76] : memref<1x4x4x64xf32, #tpu.memory_space<vmem>>, vector<1x1x4x64xf32>
    %76 = vector.shape_cast %75 : vector<1x1x4x64xf32> to vector<4x64xf32>
    %77 = vector.extract_strided_slice %76 {offsets = [0, 0], sizes = [4, 16], strides = [1, 1]} : vector<4x64xf32> to vector<4x16xf32>
    %cst_77 = arith.constant dense<0.000000e+00> : vector<4x16xf32>
    %78 = tpu.matmul %77, %0, %cst_77 {dimension_numbers = #tpu.dot_dimension_numbers<[1], [0], [0], [1], [0, 0, 1, 1], [], []>} : vector<4x16xf32>, vector<16x16xf32>, vector<4x16xf32> -> vector<4x16xf32>
    %79 = vector.extract_strided_slice %78 {offsets = [0, 0], sizes = [4, 4], strides = [1, 1]} : vector<4x16xf32> to vector<4x4xf32>
    %c0_78 = arith.constant 0 : index
    %c0_79 = arith.constant 0 : index
    %c1_80 = arith.constant 1 : index
    %c0_81 = arith.constant 0 : index
    %c0_82 = arith.constant 0 : index
    %80 = vector.load %arg4[%c0_78, %c0_79, %c1_80, %c0_81, %c0_82] : memref<1x16x4x4x4xf32, #tpu.memory_space<vmem>>, vector<1x1x1x4x4xf32>
    %81 = vector.shape_cast %80 : vector<1x1x1x4x4xf32> to vector<4x4xf32>
    %82 = vector.shape_cast %79 : vector<4x4xf32> to vector<1x1x1x4x4xf32>
    tpu.vector_store %arg4[%c0_78, %c0_79, %c1_80, %c0_81, %c0_82], %82 {strides = array<i32>} : memref<1x16x4x4x4xf32, #tpu.memory_space<vmem>>, vector<1x1x1x4x4xf32>,
    %83 = vector.extract_strided_slice %78 {offsets = [0, 4], sizes = [4, 4], strides = [1, 1]} : vector<4x16xf32> to vector<4x4xf32>
    %c0_83 = arith.constant 0 : index
    %c1_84 = arith.constant 1 : index
    %c1_85 = arith.constant 1 : index
    %c0_86 = arith.constant 0 : index
    %c0_87 = arith.constant 0 : index
    %84 = vector.load %arg4[%c0_83, %c1_84, %c1_85, %c0_86, %c0_87] : memref<1x16x4x4x4xf32, #tpu.memory_space<vmem>>, vector<1x1x1x4x4xf32>
    %85 = vector.shape_cast %84 : vector<1x1x1x4x4xf32> to vector<4x4xf32>
    %86 = vector.shape_cast %83 : vector<4x4xf32> to vector<1x1x1x4x4xf32>
    tpu.vector_store %arg4[%c0_83, %c1_84, %c1_85, %c0_86, %c0_87], %86 {strides = array<i32>} : memref<1x16x4x4x4xf32, #tpu.memory_space<vmem>>, vector<1x1x1x4x4xf32>,
    %87 = vector.extract_strided_slice %78 {offsets = [0, 8], sizes = [4, 4], strides = [1, 1]} : vector<4x16xf32> to vector<4x4xf32>
    %c0_88 = arith.constant 0 : index
    %c2_89 = arith.constant 2 : index
    %c1_90 = arith.constant 1 : index
    %c0_91 = arith.constant 0 : index
    %c0_92 = arith.constant 0 : index
    %88 = vector.load %arg4[%c0_88, %c2_89, %c1_90, %c0_91, %c0_92] : memref<1x16x4x4x4xf32, #tpu.memory_space<vmem>>, vector<1x1x1x4x4xf32>
    %89 = vector.shape_cast %88 : vector<1x1x1x4x4xf32> to vector<4x4xf32>
    %90 = vector.shape_cast %87 : vector<4x4xf32> to vector<1x1x1x4x4xf32>
    tpu.vector_store %arg4[%c0_88, %c2_89, %c1_90, %c0_91, %c0_92], %90 {strides = array<i32>} : memref<1x16x4x4x4xf32, #tpu.memory_space<vmem>>, vector<1x1x1x4x4xf32>,
    %91 = vector.extract_strided_slice %78 {offsets = [0, 12], sizes = [4, 4], strides = [1, 1]} : vector<4x16xf32> to vector<4x4xf32>
    %c0_93 = arith.constant 0 : index
    %c3_94 = arith.constant 3 : index
    %c1_95 = arith.constant 1 : index
    %c0_96 = arith.constant 0 : index
    %c0_97 = arith.constant 0 : index
    %92 = vector.load %arg4[%c0_93, %c3_94, %c1_95, %c0_96, %c0_97] : memref<1x16x4x4x4xf32, #tpu.memory_space<vmem>>, vector<1x1x1x4x4xf32>
    %93 = vector.shape_cast %92 : vector<1x1x1x4x4xf32> to vector<4x4xf32>
    %94 = vector.shape_cast %91 : vector<4x4xf32> to vector<1x1x1x4x4xf32>
    tpu.vector_store %arg4[%c0_93, %c3_94, %c1_95, %c0_96, %c0_97], %94 {strides = array<i32>} : memref<1x16x4x4x4xf32, #tpu.memory_space<vmem>>, vector<1x1x1x4x4xf32>,
    %95 = vector.extract_strided_slice %76 {offsets = [0, 16], sizes = [4, 16], strides = [1, 1]} : vector<4x64xf32> to vector<4x16xf32>
    %cst_98 = arith.constant dense<0.000000e+00> : vector<4x16xf32>
    %96 = tpu.matmul %95, %0, %cst_98 {dimension_numbers = #tpu.dot_dimension_numbers<[1], [0], [0], [1], [0, 0, 1, 1], [], []>} : vector<4x16xf32>, vector<16x16xf32>, vector<4x16xf32> -> vector<4x16xf32>
    %97 = vector.extract_strided_slice %96 {offsets = [0, 0], sizes = [4, 4], strides = [1, 1]} : vector<4x16xf32> to vector<4x4xf32>
    %c0_99 = arith.constant 0 : index
    %c4_100 = arith.constant 4 : index
    %c1_101 = arith.constant 1 : index
    %c0_102 = arith.constant 0 : index
    %c0_103 = arith.constant 0 : index
    %98 = vector.load %arg4[%c0_99, %c4_100, %c1_101, %c0_102, %c0_103] : memref<1x16x4x4x4xf32, #tpu.memory_space<vmem>>, vector<1x1x1x4x4xf32>
    %99 = vector.shape_cast %98 : vector<1x1x1x4x4xf32> to vector<4x4xf32>
    %100 = vector.shape_cast %97 : vector<4x4xf32> to vector<1x1x1x4x4xf32>
    tpu.vector_store %arg4[%c0_99, %c4_100, %c1_101, %c0_102, %c0_103], %100 {strides = array<i32>} : memref<1x16x4x4x4xf32, #tpu.memory_space<vmem>>, vector<1x1x1x4x4xf32>,
    %101 = vector.extract_strided_slice %96 {offsets = [0, 4], sizes = [4, 4], strides = [1, 1]} : vector<4x16xf32> to vector<4x4xf32>
    %c0_104 = arith.constant 0 : index
    %c5_105 = arith.constant 5 : index
    %c1_106 = arith.constant 1 : index
    %c0_107 = arith.constant 0 : index
    %c0_108 = arith.constant 0 : index
    %102 = vector.load %arg4[%c0_104, %c5_105, %c1_106, %c0_107, %c0_108] : memref<1x16x4x4x4xf32, #tpu.memory_space<vmem>>, vector<1x1x1x4x4xf32>
    %103 = vector.shape_cast %102 : vector<1x1x1x4x4xf32> to vector<4x4xf32>
    %104 = vector.shape_cast %101 : vector<4x4xf32> to vector<1x1x1x4x4xf32>
    tpu.vector_store %arg4[%c0_104, %c5_105, %c1_106, %c0_107, %c0_108], %104 {strides = array<i32>} : memref<1x16x4x4x4xf32, #tpu.memory_space<vmem>>, vector<1x1x1x4x4xf32>,
    %105 = vector.extract_strided_slice %96 {offsets = [0, 8], sizes = [4, 4], strides = [1, 1]} : vector<4x16xf32> to vector<4x4xf32>
    %c0_109 = arith.constant 0 : index
    %c6_110 = arith.constant 6 : index
    %c1_111 = arith.constant 1 : index
    %c0_112 = arith.constant 0 : index
    %c0_113 = arith.constant 0 : index
    %106 = vector.load %arg4[%c0_109, %c6_110, %c1_111, %c0_112, %c0_113] : memref<1x16x4x4x4xf32, #tpu.memory_space<vmem>>, vector<1x1x1x4x4xf32>
    %107 = vector.shape_cast %106 : vector<1x1x1x4x4xf32> to vector<4x4xf32>
    %108 = vector.shape_cast %105 : vector<4x4xf32> to vector<1x1x1x4x4xf32>
    tpu.vector_store %arg4[%c0_109, %c6_110, %c1_111, %c0_112, %c0_113], %108 {strides = array<i32>} : memref<1x16x4x4x4xf32, #tpu.memory_space<vmem>>, vector<1x1x1x4x4xf32>,
    %109 = vector.extract_strided_slice %96 {offsets = [0, 12], sizes = [4, 4], strides = [1, 1]} : vector<4x16xf32> to vector<4x4xf32>
    %c0_114 = arith.constant 0 : index
    %c7_115 = arith.constant 7 : index
    %c1_116 = arith.constant 1 : index
    %c0_117 = arith.constant 0 : index
    %c0_118 = arith.constant 0 : index
    %110 = vector.load %arg4[%c0_114, %c7_115, %c1_116, %c0_117, %c0_118] : memref<1x16x4x4x4xf32, #tpu.memory_space<vmem>>, vector<1x1x1x4x4xf32>
    %111 = vector.shape_cast %110 : vector<1x1x1x4x4xf32> to vector<4x4xf32>
    %112 = vector.shape_cast %109 : vector<4x4xf32> to vector<1x1x1x4x4xf32>
    tpu.vector_store %arg4[%c0_114, %c7_115, %c1_116, %c0_117, %c0_118], %112 {strides = array<i32>} : memref<1x16x4x4x4xf32, #tpu.memory_space<vmem>>, vector<1x1x1x4x4xf32>,
    %113 = vector.extract_strided_slice %76 {offsets = [0, 32], sizes = [4, 16], strides = [1, 1]} : vector<4x64xf32> to vector<4x16xf32>
    %cst_119 = arith.constant dense<0.000000e+00> : vector<4x16xf32>
    %114 = tpu.matmul %113, %0, %cst_119 {dimension_numbers = #tpu.dot_dimension_numbers<[1], [0], [0], [1], [0, 0, 1, 1], [], []>} : vector<4x16xf32>, vector<16x16xf32>, vector<4x16xf32> -> vector<4x16xf32>
    %115 = vector.extract_strided_slice %114 {offsets = [0, 0], sizes = [4, 4], strides = [1, 1]} : vector<4x16xf32> to vector<4x4xf32>
    %c0_120 = arith.constant 0 : index
    %c8_121 = arith.constant 8 : index
    %c1_122 = arith.constant 1 : index
    %c0_123 = arith.constant 0 : index
    %c0_124 = arith.constant 0 : index
    %116 = vector.load %arg4[%c0_120, %c8_121, %c1_122, %c0_123, %c0_124] : memref<1x16x4x4x4xf32, #tpu.memory_space<vmem>>, vector<1x1x1x4x4xf32>
    %117 = vector.shape_cast %116 : vector<1x1x1x4x4xf32> to vector<4x4xf32>
    %118 = vector.shape_cast %115 : vector<4x4xf32> to vector<1x1x1x4x4xf32>
    tpu.vector_store %arg4[%c0_120, %c8_121, %c1_122, %c0_123, %c0_124], %118 {strides = array<i32>} : memref<1x16x4x4x4xf32, #tpu.memory_space<vmem>>, vector<1x1x1x4x4xf32>,
    %119 = vector.extract_strided_slice %114 {offsets = [0, 4], sizes = [4, 4], strides = [1, 1]} : vector<4x16xf32> to vector<4x4xf32>
    %c0_125 = arith.constant 0 : index
    %c9_126 = arith.constant 9 : index
    %c1_127 = arith.constant 1 : index
    %c0_128 = arith.constant 0 : index
    %c0_129 = arith.constant 0 : index
    %120 = vector.load %arg4[%c0_125, %c9_126, %c1_127, %c0_128, %c0_129] : memref<1x16x4x4x4xf32, #tpu.memory_space<vmem>>, vector<1x1x1x4x4xf32>
    %121 = vector.shape_cast %120 : vector<1x1x1x4x4xf32> to vector<4x4xf32>
    %122 = vector.shape_cast %119 : vector<4x4xf32> to vector<1x1x1x4x4xf32>
    tpu.vector_store %arg4[%c0_125, %c9_126, %c1_127, %c0_128, %c0_129], %122 {strides = array<i32>} : memref<1x16x4x4x4xf32, #tpu.memory_space<vmem>>, vector<1x1x1x4x4xf32>,
    %123 = vector.extract_strided_slice %114 {offsets = [0, 8], sizes = [4, 4], strides = [1, 1]} : vector<4x16xf32> to vector<4x4xf32>
    %c0_130 = arith.constant 0 : index
    %c10_131 = arith.constant 10 : index
    %c1_132 = arith.constant 1 : index
    %c0_133 = arith.constant 0 : index
    %c0_134 = arith.constant 0 : index
    %124 = vector.load %arg4[%c0_130, %c10_131, %c1_132, %c0_133, %c0_134] : memref<1x16x4x4x4xf32, #tpu.memory_space<vmem>>, vector<1x1x1x4x4xf32>
    %125 = vector.shape_cast %124 : vector<1x1x1x4x4xf32> to vector<4x4xf32>
    %126 = vector.shape_cast %123 : vector<4x4xf32> to vector<1x1x1x4x4xf32>
    tpu.vector_store %arg4[%c0_130, %c10_131, %c1_132, %c0_133, %c0_134], %126 {strides = array<i32>} : memref<1x16x4x4x4xf32, #tpu.memory_space<vmem>>, vector<1x1x1x4x4xf32>,
    %127 = vector.extract_strided_slice %114 {offsets = [0, 12], sizes = [4, 4], strides = [1, 1]} : vector<4x16xf32> to vector<4x4xf32>
    %c0_135 = arith.constant 0 : index
    %c11_136 = arith.constant 11 : index
    %c1_137 = arith.constant 1 : index
    %c0_138 = arith.constant 0 : index
    %c0_139 = arith.constant 0 : index
    %128 = vector.load %arg4[%c0_135, %c11_136, %c1_137, %c0_138, %c0_139] : memref<1x16x4x4x4xf32, #tpu.memory_space<vmem>>, vector<1x1x1x4x4xf32>
    %129 = vector.shape_cast %128 : vector<1x1x1x4x4xf32> to vector<4x4xf32>
    %130 = vector.shape_cast %127 : vector<4x4xf32> to vector<1x1x1x4x4xf32>
    tpu.vector_store %arg4[%c0_135, %c11_136, %c1_137, %c0_138, %c0_139], %130 {strides = array<i32>} : memref<1x16x4x4x4xf32, #tpu.memory_space<vmem>>, vector<1x1x1x4x4xf32>,
    %131 = vector.extract_strided_slice %76 {offsets = [0, 48], sizes = [4, 16], strides = [1, 1]} : vector<4x64xf32> to vector<4x16xf32>
    %cst_140 = arith.constant dense<0.000000e+00> : vector<4x16xf32>
    %132 = tpu.matmul %131, %0, %cst_140 {dimension_numbers = #tpu.dot_dimension_numbers<[1], [0], [0], [1], [0, 0, 1, 1], [], []>} : vector<4x16xf32>, vector<16x16xf32>, vector<4x16xf32> -> vector<4x16xf32>
    %133 = vector.extract_strided_slice %132 {offsets = [0, 0], sizes = [4, 4], strides = [1, 1]} : vector<4x16xf32> to vector<4x4xf32>
    %c0_141 = arith.constant 0 : index
    %c12_142 = arith.constant 12 : index
    %c1_143 = arith.constant 1 : index
    %c0_144 = arith.constant 0 : index
    %c0_145 = arith.constant 0 : index
    %134 = vector.load %arg4[%c0_141, %c12_142, %c1_143, %c0_144, %c0_145] : memref<1x16x4x4x4xf32, #tpu.memory_space<vmem>>, vector<1x1x1x4x4xf32>
    %135 = vector.shape_cast %134 : vector<1x1x1x4x4xf32> to vector<4x4xf32>
    %136 = vector.shape_cast %133 : vector<4x4xf32> to vector<1x1x1x4x4xf32>
    tpu.vector_store %arg4[%c0_141, %c12_142, %c1_143, %c0_144, %c0_145], %136 {strides = array<i32>} : memref<1x16x4x4x4xf32, #tpu.memory_space<vmem>>, vector<1x1x1x4x4xf32>,
    %137 = vector.extract_strided_slice %132 {offsets = [0, 4], sizes = [4, 4], strides = [1, 1]} : vector<4x16xf32> to vector<4x4xf32>
    %c0_146 = arith.constant 0 : index
    %c13_147 = arith.constant 13 : index
    %c1_148 = arith.constant 1 : index
    %c0_149 = arith.constant 0 : index
    %c0_150 = arith.constant 0 : index
    %138 = vector.load %arg4[%c0_146, %c13_147, %c1_148, %c0_149, %c0_150] : memref<1x16x4x4x4xf32, #tpu.memory_space<vmem>>, vector<1x1x1x4x4xf32>
    %139 = vector.shape_cast %138 : vector<1x1x1x4x4xf32> to vector<4x4xf32>
    %140 = vector.shape_cast %137 : vector<4x4xf32> to vector<1x1x1x4x4xf32>
    tpu.vector_store %arg4[%c0_146, %c13_147, %c1_148, %c0_149, %c0_150], %140 {strides = array<i32>} : memref<1x16x4x4x4xf32, #tpu.memory_space<vmem>>, vector<1x1x1x4x4xf32>,
    %141 = vector.extract_strided_slice %132 {offsets = [0, 8], sizes = [4, 4], strides = [1, 1]} : vector<4x16xf32> to vector<4x4xf32>
    %c0_151 = arith.constant 0 : index
    %c14_152 = arith.constant 14 : index
    %c1_153 = arith.constant 1 : index
    %c0_154 = arith.constant 0 : index
    %c0_155 = arith.constant 0 : index
    %142 = vector.load %arg4[%c0_151, %c14_152, %c1_153, %c0_154, %c0_155] : memref<1x16x4x4x4xf32, #tpu.memory_space<vmem>>, vector<1x1x1x4x4xf32>
    %143 = vector.shape_cast %142 : vector<1x1x1x4x4xf32> to vector<4x4xf32>
    %144 = vector.shape_cast %141 : vector<4x4xf32> to vector<1x1x1x4x4xf32>
    tpu.vector_store %arg4[%c0_151, %c14_152, %c1_153, %c0_154, %c0_155], %144 {strides = array<i32>} : memref<1x16x4x4x4xf32, #tpu.memory_space<vmem>>, vector<1x1x1x4x4xf32>,
    %145 = vector.extract_strided_slice %132 {offsets = [0, 12], sizes = [4, 4], strides = [1, 1]} : vector<4x16xf32> to vector<4x4xf32>
    %c0_156 = arith.constant 0 : index
    %c15_157 = arith.constant 15 : index
    %c1_158 = arith.constant 1 : index
    %c0_159 = arith.constant 0 : index
    %c0_160 = arith.constant 0 : index
    %146 = vector.load %arg4[%c0_156, %c15_157, %c1_158, %c0_159, %c0_160] : memref<1x16x4x4x4xf32, #tpu.memory_space<vmem>>, vector<1x1x1x4x4xf32>
    %147 = vector.shape_cast %146 : vector<1x1x1x4x4xf32> to vector<4x4xf32>
    %148 = vector.shape_cast %145 : vector<4x4xf32> to vector<1x1x1x4x4xf32>
    tpu.vector_store %arg4[%c0_156, %c15_157, %c1_158, %c0_159, %c0_160], %148 {strides = array<i32>} : memref<1x16x4x4x4xf32, #tpu.memory_space<vmem>>, vector<1x1x1x4x4xf32>,
    %c0_161 = arith.constant 0 : index
    %c2_162 = arith.constant 2 : index
    %c0_163 = arith.constant 0 : index
    %c0_164 = arith.constant 0 : index
    %149 = vector.load %arg3[%c0_161, %c2_162, %c0_163, %c0_164] : memref<1x4x4x64xf32, #tpu.memory_space<vmem>>, vector<1x1x4x64xf32>
    %150 = vector.shape_cast %149 : vector<1x1x4x64xf32> to vector<4x64xf32>
    %151 = vector.extract_strided_slice %150 {offsets = [0, 0], sizes = [4, 16], strides = [1, 1]} : vector<4x64xf32> to vector<4x16xf32>
    %cst_165 = arith.constant dense<0.000000e+00> : vector<4x16xf32>
    %152 = tpu.matmul %151, %0, %cst_165 {dimension_numbers = #tpu.dot_dimension_numbers<[1], [0], [0], [1], [0, 0, 1, 1], [], []>} : vector<4x16xf32>, vector<16x16xf32>, vector<4x16xf32> -> vector<4x16xf32>
    %153 = vector.extract_strided_slice %152 {offsets = [0, 0], sizes = [4, 4], strides = [1, 1]} : vector<4x16xf32> to vector<4x4xf32>
    %c0_166 = arith.constant 0 : index
    %c0_167 = arith.constant 0 : index
    %c2_168 = arith.constant 2 : index
    %c0_169 = arith.constant 0 : index
    %c0_170 = arith.constant 0 : index
    %154 = vector.load %arg4[%c0_166, %c0_167, %c2_168, %c0_169, %c0_170] : memref<1x16x4x4x4xf32, #tpu.memory_space<vmem>>, vector<1x1x1x4x4xf32>
    %155 = vector.shape_cast %154 : vector<1x1x1x4x4xf32> to vector<4x4xf32>
    %156 = vector.shape_cast %153 : vector<4x4xf32> to vector<1x1x1x4x4xf32>
    tpu.vector_store %arg4[%c0_166, %c0_167, %c2_168, %c0_169, %c0_170], %156 {strides = array<i32>} : memref<1x16x4x4x4xf32, #tpu.memory_space<vmem>>, vector<1x1x1x4x4xf32>,
    %157 = vector.extract_strided_slice %152 {offsets = [0, 4], sizes = [4, 4], strides = [1, 1]} : vector<4x16xf32> to vector<4x4xf32>
    %c0_171 = arith.constant 0 : index
    %c1_172 = arith.constant 1 : index
    %c2_173 = arith.constant 2 : index
    %c0_174 = arith.constant 0 : index
    %c0_175 = arith.constant 0 : index
    %158 = vector.load %arg4[%c0_171, %c1_172, %c2_173, %c0_174, %c0_175] : memref<1x16x4x4x4xf32, #tpu.memory_space<vmem>>, vector<1x1x1x4x4xf32>
    %159 = vector.shape_cast %158 : vector<1x1x1x4x4xf32> to vector<4x4xf32>
    %160 = vector.shape_cast %157 : vector<4x4xf32> to vector<1x1x1x4x4xf32>
    tpu.vector_store %arg4[%c0_171, %c1_172, %c2_173, %c0_174, %c0_175], %160 {strides = array<i32>} : memref<1x16x4x4x4xf32, #tpu.memory_space<vmem>>, vector<1x1x1x4x4xf32>,
    %161 = vector.extract_strided_slice %152 {offsets = [0, 8], sizes = [4, 4], strides = [1, 1]} : vector<4x16xf32> to vector<4x4xf32>
    %c0_176 = arith.constant 0 : index
    %c2_177 = arith.constant 2 : index
    %c2_178 = arith.constant 2 : index
    %c0_179 = arith.constant 0 : index
    %c0_180 = arith.constant 0 : index
    %162 = vector.load %arg4[%c0_176, %c2_177, %c2_178, %c0_179, %c0_180] : memref<1x16x4x4x4xf32, #tpu.memory_space<vmem>>, vector<1x1x1x4x4xf32>
    %163 = vector.shape_cast %162 : vector<1x1x1x4x4xf32> to vector<4x4xf32>
    %164 = vector.shape_cast %161 : vector<4x4xf32> to vector<1x1x1x4x4xf32>
    tpu.vector_store %arg4[%c0_176, %c2_177, %c2_178, %c0_179, %c0_180], %164 {strides = array<i32>} : memref<1x16x4x4x4xf32, #tpu.memory_space<vmem>>, vector<1x1x1x4x4xf32>,
    %165 = vector.extract_strided_slice %152 {offsets = [0, 12], sizes = [4, 4], strides = [1, 1]} : vector<4x16xf32> to vector<4x4xf32>
    %c0_181 = arith.constant 0 : index
    %c3_182 = arith.constant 3 : index
    %c2_183 = arith.constant 2 : index
    %c0_184 = arith.constant 0 : index
    %c0_185 = arith.constant 0 : index
    %166 = vector.load %arg4[%c0_181, %c3_182, %c2_183, %c0_184, %c0_185] : memref<1x16x4x4x4xf32, #tpu.memory_space<vmem>>, vector<1x1x1x4x4xf32>
    %167 = vector.shape_cast %166 : vector<1x1x1x4x4xf32> to vector<4x4xf32>
    %168 = vector.shape_cast %165 : vector<4x4xf32> to vector<1x1x1x4x4xf32>
    tpu.vector_store %arg4[%c0_181, %c3_182, %c2_183, %c0_184, %c0_185], %168 {strides = array<i32>} : memref<1x16x4x4x4xf32, #tpu.memory_space<vmem>>, vector<1x1x1x4x4xf32>,
    %169 = vector.extract_strided_slice %150 {offsets = [0, 16], sizes = [4, 16], strides = [1, 1]} : vector<4x64xf32> to vector<4x16xf32>
    %cst_186 = arith.constant dense<0.000000e+00> : vector<4x16xf32>
    %170 = tpu.matmul %169, %0, %cst_186 {dimension_numbers = #tpu.dot_dimension_numbers<[1], [0], [0], [1], [0, 0, 1, 1], [], []>} : vector<4x16xf32>, vector<16x16xf32>, vector<4x16xf32> -> vector<4x16xf32>
    %171 = vector.extract_strided_slice %170 {offsets = [0, 0], sizes = [4, 4], strides = [1, 1]} : vector<4x16xf32> to vector<4x4xf32>
    %c0_187 = arith.constant 0 : index
    %c4_188 = arith.constant 4 : index
    %c2_189 = arith.constant 2 : index
    %c0_190 = arith.constant 0 : index
    %c0_191 = arith.constant 0 : index
    %172 = vector.load %arg4[%c0_187, %c4_188, %c2_189, %c0_190, %c0_191] : memref<1x16x4x4x4xf32, #tpu.memory_space<vmem>>, vector<1x1x1x4x4xf32>
    %173 = vector.shape_cast %172 : vector<1x1x1x4x4xf32> to vector<4x4xf32>
    %174 = vector.shape_cast %171 : vector<4x4xf32> to vector<1x1x1x4x4xf32>
    tpu.vector_store %arg4[%c0_187, %c4_188, %c2_189, %c0_190, %c0_191], %174 {strides = array<i32>} : memref<1x16x4x4x4xf32, #tpu.memory_space<vmem>>, vector<1x1x1x4x4xf32>,
    %175 = vector.extract_strided_slice %170 {offsets = [0, 4], sizes = [4, 4], strides = [1, 1]} : vector<4x16xf32> to vector<4x4xf32>
    %c0_192 = arith.constant 0 : index
    %c5_193 = arith.constant 5 : index
    %c2_194 = arith.constant 2 : index
    %c0_195 = arith.constant 0 : index
    %c0_196 = arith.constant 0 : index
    %176 = vector.load %arg4[%c0_192, %c5_193, %c2_194, %c0_195, %c0_196] : memref<1x16x4x4x4xf32, #tpu.memory_space<vmem>>, vector<1x1x1x4x4xf32>
    %177 = vector.shape_cast %176 : vector<1x1x1x4x4xf32> to vector<4x4xf32>
    %178 = vector.shape_cast %175 : vector<4x4xf32> to vector<1x1x1x4x4xf32>
    tpu.vector_store %arg4[%c0_192, %c5_193, %c2_194, %c0_195, %c0_196], %178 {strides = array<i32>} : memref<1x16x4x4x4xf32, #tpu.memory_space<vmem>>, vector<1x1x1x4x4xf32>,
    %179 = vector.extract_strided_slice %170 {offsets = [0, 8], sizes = [4, 4], strides = [1, 1]} : vector<4x16xf32> to vector<4x4xf32>
    %c0_197 = arith.constant 0 : index
    %c6_198 = arith.constant 6 : index
    %c2_199 = arith.constant 2 : index
    %c0_200 = arith.constant 0 : index
    %c0_201 = arith.constant 0 : index
    %180 = vector.load %arg4[%c0_197, %c6_198, %c2_199, %c0_200, %c0_201] : memref<1x16x4x4x4xf32, #tpu.memory_space<vmem>>, vector<1x1x1x4x4xf32>
    %181 = vector.shape_cast %180 : vector<1x1x1x4x4xf32> to vector<4x4xf32>
    %182 = vector.shape_cast %179 : vector<4x4xf32> to vector<1x1x1x4x4xf32>
    tpu.vector_store %arg4[%c0_197, %c6_198, %c2_199, %c0_200, %c0_201], %182 {strides = array<i32>} : memref<1x16x4x4x4xf32, #tpu.memory_space<vmem>>, vector<1x1x1x4x4xf32>,
    %183 = vector.extract_strided_slice %170 {offsets = [0, 12], sizes = [4, 4], strides = [1, 1]} : vector<4x16xf32> to vector<4x4xf32>
    %c0_202 = arith.constant 0 : index
    %c7_203 = arith.constant 7 : index
    %c2_204 = arith.constant 2 : index
    %c0_205 = arith.constant 0 : index
    %c0_206 = arith.constant 0 : index
    %184 = vector.load %arg4[%c0_202, %c7_203, %c2_204, %c0_205, %c0_206] : memref<1x16x4x4x4xf32, #tpu.memory_space<vmem>>, vector<1x1x1x4x4xf32>
    %185 = vector.shape_cast %184 : vector<1x1x1x4x4xf32> to vector<4x4xf32>
    %186 = vector.shape_cast %183 : vector<4x4xf32> to vector<1x1x1x4x4xf32>
    tpu.vector_store %arg4[%c0_202, %c7_203, %c2_204, %c0_205, %c0_206], %186 {strides = array<i32>} : memref<1x16x4x4x4xf32, #tpu.memory_space<vmem>>, vector<1x1x1x4x4xf32>,
    %187 = vector.extract_strided_slice %150 {offsets = [0, 32], sizes = [4, 16], strides = [1, 1]} : vector<4x64xf32> to vector<4x16xf32>
    %cst_207 = arith.constant dense<0.000000e+00> : vector<4x16xf32>
    %188 = tpu.matmul %187, %0, %cst_207 {dimension_numbers = #tpu.dot_dimension_numbers<[1], [0], [0], [1], [0, 0, 1, 1], [], []>} : vector<4x16xf32>, vector<16x16xf32>, vector<4x16xf32> -> vector<4x16xf32>
    %189 = vector.extract_strided_slice %188 {offsets = [0, 0], sizes = [4, 4], strides = [1, 1]} : vector<4x16xf32> to vector<4x4xf32>
    %c0_208 = arith.constant 0 : index
    %c8_209 = arith.constant 8 : index
    %c2_210 = arith.constant 2 : index
    %c0_211 = arith.constant 0 : index
    %c0_212 = arith.constant 0 : index
    %190 = vector.load %arg4[%c0_208, %c8_209, %c2_210, %c0_211, %c0_212] : memref<1x16x4x4x4xf32, #tpu.memory_space<vmem>>, vector<1x1x1x4x4xf32>
    %191 = vector.shape_cast %190 : vector<1x1x1x4x4xf32> to vector<4x4xf32>
    %192 = vector.shape_cast %189 : vector<4x4xf32> to vector<1x1x1x4x4xf32>
    tpu.vector_store %arg4[%c0_208, %c8_209, %c2_210, %c0_211, %c0_212], %192 {strides = array<i32>} : memref<1x16x4x4x4xf32, #tpu.memory_space<vmem>>, vector<1x1x1x4x4xf32>,
    %193 = vector.extract_strided_slice %188 {offsets = [0, 4], sizes = [4, 4], strides = [1, 1]} : vector<4x16xf32> to vector<4x4xf32>
    %c0_213 = arith.constant 0 : index
    %c9_214 = arith.constant 9 : index
    %c2_215 = arith.constant 2 : index
    %c0_216 = arith.constant 0 : index
    %c0_217 = arith.constant 0 : index
    %194 = vector.load %arg4[%c0_213, %c9_214, %c2_215, %c0_216, %c0_217] : memref<1x16x4x4x4xf32, #tpu.memory_space<vmem>>, vector<1x1x1x4x4xf32>
    %195 = vector.shape_cast %194 : vector<1x1x1x4x4xf32> to vector<4x4xf32>
    %196 = vector.shape_cast %193 : vector<4x4xf32> to vector<1x1x1x4x4xf32>
    tpu.vector_store %arg4[%c0_213, %c9_214, %c2_215, %c0_216, %c0_217], %196 {strides = array<i32>} : memref<1x16x4x4x4xf32, #tpu.memory_space<vmem>>, vector<1x1x1x4x4xf32>,
    %197 = vector.extract_strided_slice %188 {offsets = [0, 8], sizes = [4, 4], strides = [1, 1]} : vector<4x16xf32> to vector<4x4xf32>
    %c0_218 = arith.constant 0 : index
    %c10_219 = arith.constant 10 : index
    %c2_220 = arith.constant 2 : index
    %c0_221 = arith.constant 0 : index
    %c0_222 = arith.constant 0 : index
    %198 = vector.load %arg4[%c0_218, %c10_219, %c2_220, %c0_221, %c0_222] : memref<1x16x4x4x4xf32, #tpu.memory_space<vmem>>, vector<1x1x1x4x4xf32>
    %199 = vector.shape_cast %198 : vector<1x1x1x4x4xf32> to vector<4x4xf32>
    %200 = vector.shape_cast %197 : vector<4x4xf32> to vector<1x1x1x4x4xf32>
    tpu.vector_store %arg4[%c0_218, %c10_219, %c2_220, %c0_221, %c0_222], %200 {strides = array<i32>} : memref<1x16x4x4x4xf32, #tpu.memory_space<vmem>>, vector<1x1x1x4x4xf32>,
    %201 = vector.extract_strided_slice %188 {offsets = [0, 12], sizes = [4, 4], strides = [1, 1]} : vector<4x16xf32> to vector<4x4xf32>
    %c0_223 = arith.constant 0 : index
    %c11_224 = arith.constant 11 : index
    %c2_225 = arith.constant 2 : index
    %c0_226 = arith.constant 0 : index
    %c0_227 = arith.constant 0 : index
    %202 = vector.load %arg4[%c0_223, %c11_224, %c2_225, %c0_226, %c0_227] : memref<1x16x4x4x4xf32, #tpu.memory_space<vmem>>, vector<1x1x1x4x4xf32>
    %203 = vector.shape_cast %202 : vector<1x1x1x4x4xf32> to vector<4x4xf32>
    %204 = vector.shape_cast %201 : vector<4x4xf32> to vector<1x1x1x4x4xf32>
    tpu.vector_store %arg4[%c0_223, %c11_224, %c2_225, %c0_226, %c0_227], %204 {strides = array<i32>} : memref<1x16x4x4x4xf32, #tpu.memory_space<vmem>>, vector<1x1x1x4x4xf32>,
    %205 = vector.extract_strided_slice %150 {offsets = [0, 48], sizes = [4, 16], strides = [1, 1]} : vector<4x64xf32> to vector<4x16xf32>
    %cst_228 = arith.constant dense<0.000000e+00> : vector<4x16xf32>
    %206 = tpu.matmul %205, %0, %cst_228 {dimension_numbers = #tpu.dot_dimension_numbers<[1], [0], [0], [1], [0, 0, 1, 1], [], []>} : vector<4x16xf32>, vector<16x16xf32>, vector<4x16xf32> -> vector<4x16xf32>
    %207 = vector.extract_strided_slice %206 {offsets = [0, 0], sizes = [4, 4], strides = [1, 1]} : vector<4x16xf32> to vector<4x4xf32>
    %c0_229 = arith.constant 0 : index
    %c12_230 = arith.constant 12 : index
    %c2_231 = arith.constant 2 : index
    %c0_232 = arith.constant 0 : index
    %c0_233 = arith.constant 0 : index
    %208 = vector.load %arg4[%c0_229, %c12_230, %c2_231, %c0_232, %c0_233] : memref<1x16x4x4x4xf32, #tpu.memory_space<vmem>>, vector<1x1x1x4x4xf32>
    %209 = vector.shape_cast %208 : vector<1x1x1x4x4xf32> to vector<4x4xf32>
    %210 = vector.shape_cast %207 : vector<4x4xf32> to vector<1x1x1x4x4xf32>
    tpu.vector_store %arg4[%c0_229, %c12_230, %c2_231, %c0_232, %c0_233], %210 {strides = array<i32>} : memref<1x16x4x4x4xf32, #tpu.memory_space<vmem>>, vector<1x1x1x4x4xf32>,
    %211 = vector.extract_strided_slice %206 {offsets = [0, 4], sizes = [4, 4], strides = [1, 1]} : vector<4x16xf32> to vector<4x4xf32>
    %c0_234 = arith.constant 0 : index
    %c13_235 = arith.constant 13 : index
    %c2_236 = arith.constant 2 : index
    %c0_237 = arith.constant 0 : index
    %c0_238 = arith.constant 0 : index
    %212 = vector.load %arg4[%c0_234, %c13_235, %c2_236, %c0_237, %c0_238] : memref<1x16x4x4x4xf32, #tpu.memory_space<vmem>>, vector<1x1x1x4x4xf32>
    %213 = vector.shape_cast %212 : vector<1x1x1x4x4xf32> to vector<4x4xf32>
    %214 = vector.shape_cast %211 : vector<4x4xf32> to vector<1x1x1x4x4xf32>
    tpu.vector_store %arg4[%c0_234, %c13_235, %c2_236, %c0_237, %c0_238], %214 {strides = array<i32>} : memref<1x16x4x4x4xf32, #tpu.memory_space<vmem>>, vector<1x1x1x4x4xf32>,
    %215 = vector.extract_strided_slice %206 {offsets = [0, 8], sizes = [4, 4], strides = [1, 1]} : vector<4x16xf32> to vector<4x4xf32>
    %c0_239 = arith.constant 0 : index
    %c14_240 = arith.constant 14 : index
    %c2_241 = arith.constant 2 : index
    %c0_242 = arith.constant 0 : index
    %c0_243 = arith.constant 0 : index
    %216 = vector.load %arg4[%c0_239, %c14_240, %c2_241, %c0_242, %c0_243] : memref<1x16x4x4x4xf32, #tpu.memory_space<vmem>>, vector<1x1x1x4x4xf32>
    %217 = vector.shape_cast %216 : vector<1x1x1x4x4xf32> to vector<4x4xf32>
    %218 = vector.shape_cast %215 : vector<4x4xf32> to vector<1x1x1x4x4xf32>
    tpu.vector_store %arg4[%c0_239, %c14_240, %c2_241, %c0_242, %c0_243], %218 {strides = array<i32>} : memref<1x16x4x4x4xf32, #tpu.memory_space<vmem>>, vector<1x1x1x4x4xf32>,
    %219 = vector.extract_strided_slice %206 {offsets = [0, 12], sizes = [4, 4], strides = [1, 1]} : vector<4x16xf32> to vector<4x4xf32>
    %c0_244 = arith.constant 0 : index
    %c15_245 = arith.constant 15 : index
    %c2_246 = arith.constant 2 : index
    %c0_247 = arith.constant 0 : index
    %c0_248 = arith.constant 0 : index
    %220 = vector.load %arg4[%c0_244, %c15_245, %c2_246, %c0_247, %c0_248] : memref<1x16x4x4x4xf32, #tpu.memory_space<vmem>>, vector<1x1x1x4x4xf32>
    %221 = vector.shape_cast %220 : vector<1x1x1x4x4xf32> to vector<4x4xf32>
    %222 = vector.shape_cast %219 : vector<4x4xf32> to vector<1x1x1x4x4xf32>
    tpu.vector_store %arg4[%c0_244, %c15_245, %c2_246, %c0_247, %c0_248], %222 {strides = array<i32>} : memref<1x16x4x4x4xf32, #tpu.memory_space<vmem>>, vector<1x1x1x4x4xf32>,
    %c0_249 = arith.constant 0 : index
    %c3_250 = arith.constant 3 : index
    %c0_251 = arith.constant 0 : index
    %c0_252 = arith.constant 0 : index
    %223 = vector.load %arg3[%c0_249, %c3_250, %c0_251, %c0_252] : memref<1x4x4x64xf32, #tpu.memory_space<vmem>>, vector<1x1x4x64xf32>
    %224 = vector.shape_cast %223 : vector<1x1x4x64xf32> to vector<4x64xf32>
    %225 = vector.extract_strided_slice %224 {offsets = [0, 0], sizes = [4, 16], strides = [1, 1]} : vector<4x64xf32> to vector<4x16xf32>
    %cst_253 = arith.constant dense<0.000000e+00> : vector<4x16xf32>
    %226 = tpu.matmul %225, %0, %cst_253 {dimension_numbers = #tpu.dot_dimension_numbers<[1], [0], [0], [1], [0, 0, 1, 1], [], []>} : vector<4x16xf32>, vector<16x16xf32>, vector<4x16xf32> -> vector<4x16xf32>
    %227 = vector.extract_strided_slice %226 {offsets = [0, 0], sizes = [4, 4], strides = [1, 1]} : vector<4x16xf32> to vector<4x4xf32>
    %c0_254 = arith.constant 0 : index
    %c0_255 = arith.constant 0 : index
    %c3_256 = arith.constant 3 : index
    %c0_257 = arith.constant 0 : index
    %c0_258 = arith.constant 0 : index
    %228 = vector.load %arg4[%c0_254, %c0_255, %c3_256, %c0_257, %c0_258] : memref<1x16x4x4x4xf32, #tpu.memory_space<vmem>>, vector<1x1x1x4x4xf32>
    %229 = vector.shape_cast %228 : vector<1x1x1x4x4xf32> to vector<4x4xf32>
    %230 = vector.shape_cast %227 : vector<4x4xf32> to vector<1x1x1x4x4xf32>
    tpu.vector_store %arg4[%c0_254, %c0_255, %c3_256, %c0_257, %c0_258], %230 {strides = array<i32>} : memref<1x16x4x4x4xf32, #tpu.memory_space<vmem>>, vector<1x1x1x4x4xf32>,
    %231 = vector.extract_strided_slice %226 {offsets = [0, 4], sizes = [4, 4], strides = [1, 1]} : vector<4x16xf32> to vector<4x4xf32>
    %c0_259 = arith.constant 0 : index
    %c1_260 = arith.constant 1 : index
    %c3_261 = arith.constant 3 : index
    %c0_262 = arith.constant 0 : index
    %c0_263 = arith.constant 0 : index
    %232 = vector.load %arg4[%c0_259, %c1_260, %c3_261, %c0_262, %c0_263] : memref<1x16x4x4x4xf32, #tpu.memory_space<vmem>>, vector<1x1x1x4x4xf32>
    %233 = vector.shape_cast %232 : vector<1x1x1x4x4xf32> to vector<4x4xf32>
    %234 = vector.shape_cast %231 : vector<4x4xf32> to vector<1x1x1x4x4xf32>
    tpu.vector_store %arg4[%c0_259, %c1_260, %c3_261, %c0_262, %c0_263], %234 {strides = array<i32>} : memref<1x16x4x4x4xf32, #tpu.memory_space<vmem>>, vector<1x1x1x4x4xf32>,
    %235 = vector.extract_strided_slice %226 {offsets = [0, 8], sizes = [4, 4], strides = [1, 1]} : vector<4x16xf32> to vector<4x4xf32>
    %c0_264 = arith.constant 0 : index
    %c2_265 = arith.constant 2 : index
    %c3_266 = arith.constant 3 : index
    %c0_267 = arith.constant 0 : index
    %c0_268 = arith.constant 0 : index
    %236 = vector.load %arg4[%c0_264, %c2_265, %c3_266, %c0_267, %c0_268] : memref<1x16x4x4x4xf32, #tpu.memory_space<vmem>>, vector<1x1x1x4x4xf32>
    %237 = vector.shape_cast %236 : vector<1x1x1x4x4xf32> to vector<4x4xf32>
    %238 = vector.shape_cast %235 : vector<4x4xf32> to vector<1x1x1x4x4xf32>
    tpu.vector_store %arg4[%c0_264, %c2_265, %c3_266, %c0_267, %c0_268], %238 {strides = array<i32>} : memref<1x16x4x4x4xf32, #tpu.memory_space<vmem>>, vector<1x1x1x4x4xf32>,
    %239 = vector.extract_strided_slice %226 {offsets = [0, 12], sizes = [4, 4], strides = [1, 1]} : vector<4x16xf32> to vector<4x4xf32>
    %c0_269 = arith.constant 0 : index
    %c3_270 = arith.constant 3 : index
    %c3_271 = arith.constant 3 : index
    %c0_272 = arith.constant 0 : index
    %c0_273 = arith.constant 0 : index
    %240 = vector.load %arg4[%c0_269, %c3_270, %c3_271, %c0_272, %c0_273] : memref<1x16x4x4x4xf32, #tpu.memory_space<vmem>>, vector<1x1x1x4x4xf32>
    %241 = vector.shape_cast %240 : vector<1x1x1x4x4xf32> to vector<4x4xf32>
    %242 = vector.shape_cast %239 : vector<4x4xf32> to vector<1x1x1x4x4xf32>
    tpu.vector_store %arg4[%c0_269, %c3_270, %c3_271, %c0_272, %c0_273], %242 {strides = array<i32>} : memref<1x16x4x4x4xf32, #tpu.memory_space<vmem>>, vector<1x1x1x4x4xf32>,
    %243 = vector.extract_strided_slice %224 {offsets = [0, 16], sizes = [4, 16], strides = [1, 1]} : vector<4x64xf32> to vector<4x16xf32>
    %cst_274 = arith.constant dense<0.000000e+00> : vector<4x16xf32>
    %244 = tpu.matmul %243, %0, %cst_274 {dimension_numbers = #tpu.dot_dimension_numbers<[1], [0], [0], [1], [0, 0, 1, 1], [], []>} : vector<4x16xf32>, vector<16x16xf32>, vector<4x16xf32> -> vector<4x16xf32>
    %245 = vector.extract_strided_slice %244 {offsets = [0, 0], sizes = [4, 4], strides = [1, 1]} : vector<4x16xf32> to vector<4x4xf32>
    %c0_275 = arith.constant 0 : index
    %c4_276 = arith.constant 4 : index
    %c3_277 = arith.constant 3 : index
    %c0_278 = arith.constant 0 : index
    %c0_279 = arith.constant 0 : index
    %246 = vector.load %arg4[%c0_275, %c4_276, %c3_277, %c0_278, %c0_279] : memref<1x16x4x4x4xf32, #tpu.memory_space<vmem>>, vector<1x1x1x4x4xf32>
    %247 = vector.shape_cast %246 : vector<1x1x1x4x4xf32> to vector<4x4xf32>
    %248 = vector.shape_cast %245 : vector<4x4xf32> to vector<1x1x1x4x4xf32>
    tpu.vector_store %arg4[%c0_275, %c4_276, %c3_277, %c0_278, %c0_279], %248 {strides = array<i32>} : memref<1x16x4x4x4xf32, #tpu.memory_space<vmem>>, vector<1x1x1x4x4xf32>,
    %249 = vector.extract_strided_slice %244 {offsets = [0, 4], sizes = [4, 4], strides = [1, 1]} : vector<4x16xf32> to vector<4x4xf32>
    %c0_280 = arith.constant 0 : index
    %c5_281 = arith.constant 5 : index
    %c3_282 = arith.constant 3 : index
    %c0_283 = arith.constant 0 : index
    %c0_284 = arith.constant 0 : index
    %250 = vector.load %arg4[%c0_280, %c5_281, %c3_282, %c0_283, %c0_284] : memref<1x16x4x4x4xf32, #tpu.memory_space<vmem>>, vector<1x1x1x4x4xf32>
    %251 = vector.shape_cast %250 : vector<1x1x1x4x4xf32> to vector<4x4xf32>
    %252 = vector.shape_cast %249 : vector<4x4xf32> to vector<1x1x1x4x4xf32>
    tpu.vector_store %arg4[%c0_280, %c5_281, %c3_282, %c0_283, %c0_284], %252 {strides = array<i32>} : memref<1x16x4x4x4xf32, #tpu.memory_space<vmem>>, vector<1x1x1x4x4xf32>,
    %253 = vector.extract_strided_slice %244 {offsets = [0, 8], sizes = [4, 4], strides = [1, 1]} : vector<4x16xf32> to vector<4x4xf32>
    %c0_285 = arith.constant 0 : index
    %c6_286 = arith.constant 6 : index
    %c3_287 = arith.constant 3 : index
    %c0_288 = arith.constant 0 : index
    %c0_289 = arith.constant 0 : index
    %254 = vector.load %arg4[%c0_285, %c6_286, %c3_287, %c0_288, %c0_289] : memref<1x16x4x4x4xf32, #tpu.memory_space<vmem>>, vector<1x1x1x4x4xf32>
    %255 = vector.shape_cast %254 : vector<1x1x1x4x4xf32> to vector<4x4xf32>
    %256 = vector.shape_cast %253 : vector<4x4xf32> to vector<1x1x1x4x4xf32>
    tpu.vector_store %arg4[%c0_285, %c6_286, %c3_287, %c0_288, %c0_289], %256 {strides = array<i32>} : memref<1x16x4x4x4xf32, #tpu.memory_space<vmem>>, vector<1x1x1x4x4xf32>,
    %257 = vector.extract_strided_slice %244 {offsets = [0, 12], sizes = [4, 4], strides = [1, 1]} : vector<4x16xf32> to vector<4x4xf32>
    %c0_290 = arith.constant 0 : index
    %c7_291 = arith.constant 7 : index
    %c3_292 = arith.constant 3 : index
    %c0_293 = arith.constant 0 : index
    %c0_294 = arith.constant 0 : index
    %258 = vector.load %arg4[%c0_290, %c7_291, %c3_292, %c0_293, %c0_294] : memref<1x16x4x4x4xf32, #tpu.memory_space<vmem>>, vector<1x1x1x4x4xf32>
    %259 = vector.shape_cast %258 : vector<1x1x1x4x4xf32> to vector<4x4xf32>
    %260 = vector.shape_cast %257 : vector<4x4xf32> to vector<1x1x1x4x4xf32>
    tpu.vector_store %arg4[%c0_290, %c7_291, %c3_292, %c0_293, %c0_294], %260 {strides = array<i32>} : memref<1x16x4x4x4xf32, #tpu.memory_space<vmem>>, vector<1x1x1x4x4xf32>,
    %261 = vector.extract_strided_slice %224 {offsets = [0, 32], sizes = [4, 16], strides = [1, 1]} : vector<4x64xf32> to vector<4x16xf32>
    %cst_295 = arith.constant dense<0.000000e+00> : vector<4x16xf32>
    %262 = tpu.matmul %261, %0, %cst_295 {dimension_numbers = #tpu.dot_dimension_numbers<[1], [0], [0], [1], [0, 0, 1, 1], [], []>} : vector<4x16xf32>, vector<16x16xf32>, vector<4x16xf32> -> vector<4x16xf32>
    %263 = vector.extract_strided_slice %262 {offsets = [0, 0], sizes = [4, 4], strides = [1, 1]} : vector<4x16xf32> to vector<4x4xf32>
    %c0_296 = arith.constant 0 : index
    %c8_297 = arith.constant 8 : index
    %c3_298 = arith.constant 3 : index
    %c0_299 = arith.constant 0 : index
    %c0_300 = arith.constant 0 : index
    %264 = vector.load %arg4[%c0_296, %c8_297, %c3_298, %c0_299, %c0_300] : memref<1x16x4x4x4xf32, #tpu.memory_space<vmem>>, vector<1x1x1x4x4xf32>
    %265 = vector.shape_cast %264 : vector<1x1x1x4x4xf32> to vector<4x4xf32>
    %266 = vector.shape_cast %263 : vector<4x4xf32> to vector<1x1x1x4x4xf32>
    tpu.vector_store %arg4[%c0_296, %c8_297, %c3_298, %c0_299, %c0_300], %266 {strides = array<i32>} : memref<1x16x4x4x4xf32, #tpu.memory_space<vmem>>, vector<1x1x1x4x4xf32>,
    %267 = vector.extract_strided_slice %262 {offsets = [0, 4], sizes = [4, 4], strides = [1, 1]} : vector<4x16xf32> to vector<4x4xf32>
    %c0_301 = arith.constant 0 : index
    %c9_302 = arith.constant 9 : index
    %c3_303 = arith.constant 3 : index
    %c0_304 = arith.constant 0 : index
    %c0_305 = arith.constant 0 : index
    %268 = vector.load %arg4[%c0_301, %c9_302, %c3_303, %c0_304, %c0_305] : memref<1x16x4x4x4xf32, #tpu.memory_space<vmem>>, vector<1x1x1x4x4xf32>
    %269 = vector.shape_cast %268 : vector<1x1x1x4x4xf32> to vector<4x4xf32>
    %270 = vector.shape_cast %267 : vector<4x4xf32> to vector<1x1x1x4x4xf32>
    tpu.vector_store %arg4[%c0_301, %c9_302, %c3_303, %c0_304, %c0_305], %270 {strides = array<i32>} : memref<1x16x4x4x4xf32, #tpu.memory_space<vmem>>, vector<1x1x1x4x4xf32>,
    %271 = vector.extract_strided_slice %262 {offsets = [0, 8], sizes = [4, 4], strides = [1, 1]} : vector<4x16xf32> to vector<4x4xf32>
    %c0_306 = arith.constant 0 : index
    %c10_307 = arith.constant 10 : index
    %c3_308 = arith.constant 3 : index
    %c0_309 = arith.constant 0 : index
    %c0_310 = arith.constant 0 : index
    %272 = vector.load %arg4[%c0_306, %c10_307, %c3_308, %c0_309, %c0_310] : memref<1x16x4x4x4xf32, #tpu.memory_space<vmem>>, vector<1x1x1x4x4xf32>
    %273 = vector.shape_cast %272 : vector<1x1x1x4x4xf32> to vector<4x4xf32>
    %274 = vector.shape_cast %271 : vector<4x4xf32> to vector<1x1x1x4x4xf32>
    tpu.vector_store %arg4[%c0_306, %c10_307, %c3_308, %c0_309, %c0_310], %274 {strides = array<i32>} : memref<1x16x4x4x4xf32, #tpu.memory_space<vmem>>, vector<1x1x1x4x4xf32>,
    %275 = vector.extract_strided_slice %262 {offsets = [0, 12], sizes = [4, 4], strides = [1, 1]} : vector<4x16xf32> to vector<4x4xf32>
    %c0_311 = arith.constant 0 : index
    %c11_312 = arith.constant 11 : index
    %c3_313 = arith.constant 3 : index
    %c0_314 = arith.constant 0 : index
    %c0_315 = arith.constant 0 : index
    %276 = vector.load %arg4[%c0_311, %c11_312, %c3_313, %c0_314, %c0_315] : memref<1x16x4x4x4xf32, #tpu.memory_space<vmem>>, vector<1x1x1x4x4xf32>
    %277 = vector.shape_cast %276 : vector<1x1x1x4x4xf32> to vector<4x4xf32>
    %278 = vector.shape_cast %275 : vector<4x4xf32> to vector<1x1x1x4x4xf32>
    tpu.vector_store %arg4[%c0_311, %c11_312, %c3_313, %c0_314, %c0_315], %278 {strides = array<i32>} : memref<1x16x4x4x4xf32, #tpu.memory_space<vmem>>, vector<1x1x1x4x4xf32>,
    %279 = vector.extract_strided_slice %224 {offsets = [0, 48], sizes = [4, 16], strides = [1, 1]} : vector<4x64xf32> to vector<4x16xf32>
    %cst_316 = arith.constant dense<0.000000e+00> : vector<4x16xf32>
    %280 = tpu.matmul %279, %0, %cst_316 {dimension_numbers = #tpu.dot_dimension_numbers<[1], [0], [0], [1], [0, 0, 1, 1], [], []>} : vector<4x16xf32>, vector<16x16xf32>, vector<4x16xf32> -> vector<4x16xf32>
    %281 = vector.extract_strided_slice %280 {offsets = [0, 0], sizes = [4, 4], strides = [1, 1]} : vector<4x16xf32> to vector<4x4xf32>
    %c0_317 = arith.constant 0 : index
    %c12_318 = arith.constant 12 : index
    %c3_319 = arith.constant 3 : index
    %c0_320 = arith.constant 0 : index
    %c0_321 = arith.constant 0 : index
    %282 = vector.load %arg4[%c0_317, %c12_318, %c3_319, %c0_320, %c0_321] : memref<1x16x4x4x4xf32, #tpu.memory_space<vmem>>, vector<1x1x1x4x4xf32>
    %283 = vector.shape_cast %282 : vector<1x1x1x4x4xf32> to vector<4x4xf32>
    %284 = vector.shape_cast %281 : vector<4x4xf32> to vector<1x1x1x4x4xf32>
    tpu.vector_store %arg4[%c0_317, %c12_318, %c3_319, %c0_320, %c0_321], %284 {strides = array<i32>} : memref<1x16x4x4x4xf32, #tpu.memory_space<vmem>>, vector<1x1x1x4x4xf32>,
    %285 = vector.extract_strided_slice %280 {offsets = [0, 4], sizes = [4, 4], strides = [1, 1]} : vector<4x16xf32> to vector<4x4xf32>
    %c0_322 = arith.constant 0 : index
    %c13_323 = arith.constant 13 : index
    %c3_324 = arith.constant 3 : index
    %c0_325 = arith.constant 0 : index
    %c0_326 = arith.constant 0 : index
    %286 = vector.load %arg4[%c0_322, %c13_323, %c3_324, %c0_325, %c0_326] : memref<1x16x4x4x4xf32, #tpu.memory_space<vmem>>, vector<1x1x1x4x4xf32>
    %287 = vector.shape_cast %286 : vector<1x1x1x4x4xf32> to vector<4x4xf32>
    %288 = vector.shape_cast %285 : vector<4x4xf32> to vector<1x1x1x4x4xf32>
    tpu.vector_store %arg4[%c0_322, %c13_323, %c3_324, %c0_325, %c0_326], %288 {strides = array<i32>} : memref<1x16x4x4x4xf32, #tpu.memory_space<vmem>>, vector<1x1x1x4x4xf32>,
    %289 = vector.extract_strided_slice %280 {offsets = [0, 8], sizes = [4, 4], strides = [1, 1]} : vector<4x16xf32> to vector<4x4xf32>
    %c0_327 = arith.constant 0 : index
    %c14_328 = arith.constant 14 : index
    %c3_329 = arith.constant 3 : index
    %c0_330 = arith.constant 0 : index
    %c0_331 = arith.constant 0 : index
    %290 = vector.load %arg4[%c0_327, %c14_328, %c3_329, %c0_330, %c0_331] : memref<1x16x4x4x4xf32, #tpu.memory_space<vmem>>, vector<1x1x1x4x4xf32>
    %291 = vector.shape_cast %290 : vector<1x1x1x4x4xf32> to vector<4x4xf32>
    %292 = vector.shape_cast %289 : vector<4x4xf32> to vector<1x1x1x4x4xf32>
    tpu.vector_store %arg4[%c0_327, %c14_328, %c3_329, %c0_330, %c0_331], %292 {strides = array<i32>} : memref<1x16x4x4x4xf32, #tpu.memory_space<vmem>>, vector<1x1x1x4x4xf32>,
    %293 = vector.extract_strided_slice %280 {offsets = [0, 12], sizes = [4, 4], strides = [1, 1]} : vector<4x16xf32> to vector<4x4xf32>
    %c0_332 = arith.constant 0 : index
    %c15_333 = arith.constant 15 : index
    %c3_334 = arith.constant 3 : index
    %c0_335 = arith.constant 0 : index
    %c0_336 = arith.constant 0 : index
    %294 = vector.load %arg4[%c0_332, %c15_333, %c3_334, %c0_335, %c0_336] : memref<1x16x4x4x4xf32, #tpu.memory_space<vmem>>, vector<1x1x1x4x4xf32>
    %295 = vector.shape_cast %294 : vector<1x1x1x4x4xf32> to vector<4x4xf32>
    %296 = vector.shape_cast %293 : vector<4x4xf32> to vector<1x1x1x4x4xf32>
    tpu.vector_store %arg4[%c0_332, %c15_333, %c3_334, %c0_335, %c0_336], %296 {strides = array<i32>} : memref<1x16x4x4x4xf32, #tpu.memory_space<vmem>>, vector<1x1x1x4x4xf32>,
    return
  }
  func.func @transform_0(%arg0: i32, %arg1: i32) -> (i32, i32) {
    %c0_i32 = arith.constant 0 : i32
    %c0_i32_0 = arith.constant 0 : i32
    %c0_i32_1 = arith.constant 0 : i32
    return %c0_i32, %c0_i32_0 : i32, i32
  }
  func.func @transform_1(%arg0: i32, %arg1: i32) -> (i32, i32, i32, i32) {
    %c0_i32 = arith.constant 0 : i32
    %c0_i32_0 = arith.constant 0 : i32
    %c0_i32_1 = arith.constant 0 : i32
    return %arg0, %arg1, %c0_i32, %c0_i32_0 : i32, i32, i32, i32
  }
  func.func @transform_2(%arg0: i32, %arg1: i32) -> (i32, i32, i32, i32, i32) {
    %c0_i32 = arith.constant 0 : i32
    %c0_i32_0 = arith.constant 0 : i32
    %c0_i32_1 = arith.constant 0 : i32
    %c0_i32_2 = arith.constant 0 : i32
    return %arg0, %c0_i32, %arg1, %c0_i32_0, %c0_i32_1 : i32, i32, i32, i32, i32
  }
}

</mosaic_0001>

<bundles_post_ra>
// kernel: tpu_custom_call.1
= control target key start
LH: loop header
LB: loop body
LE: loop exit
PB: predicated region body
PF: predicated region fallthrough
CT: control target
= control target key end

     0   :  { %7 = vsyncpa [#allocation3], 0  ;;  %s2746_s0 = inlined_call_operand.hbm [shape: f32[16,16], index: 0, kind: input, shape index: {}]   ;;  %s2747_s1 = inlined_call_operand.hbm [shape: f32[2,4,4,64], index: 1, kind: input, shape index: {}]   ;;  %s2748_s2 = inlined_call_operand.vmem [shape: f32[2,16,4,4,4], index: 2, kind: output, shape index: {}]  }
   0x1   :  { %8 = vsyncpa [#allocation5], 0 }
   0x2   :  { %10 = vsyncpa [#allocation5 + $0x1], 0  ;;  %s2322_s9 = smov 0   ;;  %s2324_s10 = smov 0  }
   0x3   :  { %s2326_s11 = smov 0   ;;  %s2328_s12 = smov 0  }
   0x4   :  { %s2330_s13 = smov 0   ;;  %s2332_s14 = smov 0  }
   0x5 LB: > { %s1792_s15 = sadd.s32 4294967295, %s2290_s14   ;;  %p71_p0 = scmp.ne.s32.totalorder %s2274_s10, %s2270_s9  ;;  %s2290_s14 = sphi %s2332_s14, %s16_s14   ;;  %s2286_s13 = sphi %s2330_s13, %s2765_s13   ;;  %s2282_s12 = sphi %s2328_s12, %s2764_s12   ;;  %s2278_s11 = sphi %s2326_s11, %s2763_s11   ;;  %s2274_s10 = sphi %s2324_s10, %s2762_s10   ;;  %s2270_s9 = sphi %s2322_s9, %s2761_s9  }
   0x6   : > { %p2352_p1 = scmp.eq.s32.totalorder %s1792_s15, 0  ;;  %p1794_p2 = scmp.ge.s32.totalorder %s2290_s14, 1 }
   0x7   : > { %p110_p3 = scmp.lt.s32.totalorder %s2290_s14, 3  ;;  %s2292_s19 = smov [#allocation2]  }
   0x8   : > { %s2753_s16 = scalar_select %p2352_p1, 1, 0 }
   0x9   : > { %p2360_p4 = por %p2352_p1, %p71_p0  ;;  %p2364_p5 = pnand %p1794_p2, %p110_p3 }
   0xa   : > { %s122_s20 = sshll.u32 %s2292_s19, 4  ;;  %s28_s22 = sadd.s32 1, %s2286_s13  ;;  %s123_s20 = int_to_ptr.vmem [resolvable:$true] %s122_s20 }
   0xb   : > { %s2754_s17 = scalar_select %p2360_p4, 1, 0 }
   0xc   : > { %s2755_s18 = scalar_select %p2364_p5, 1, 0 }
   0xd   : > { %p2105_p6 = pneg %p2364_p5  ;;  %s2178_s25 = scalar_lea.hbm %s2746_s0, 256 }
   0xe   : > { %p2179_p8 = scmp.ne.s32.totalorder %s2746_s0, %s2178_s25  ;;  %p2185_p12 = scmp.lt.u32.totalorder %s2178_s25, %s2746_s0 }
   0xf   : > { %p2372_p7 = pnand %p2105_p6, %p2352_p1 }
  0x11   : > { %p2180_p9 = pneg %p2372_p7 }
  0x13   : > { %p2181_p10 = pnand %p2180_p9, %p2179_p8 }
  0x15   : > { %p2182_p11 = pneg %p2181_p10 }
  0x17   : > { %p2187_p13 = pnand %p2185_p12, %p2182_p11 }
  0x19   : > { %2190 = shalt.err (!%p2187_p13)
}
  0x1a   : > { %s2191_s30 = scalar_lea.vmem %s123_s20, 256  ;;  %p2199_p6 = scmp.lt.s32.totalorder %s123_s20, %s123_s20 }
  0x1b   : > { %p2192_p0 = scmp.ne.s32.totalorder %s123_s20, %s2191_s30  ;;  %p2200_p4 = scmp.lt.s32.totalorder %s2191_s30, %s2191_s30 }
  0x1d   : > { %p2194_p2 = pnand %p2192_p0, %p2180_p9  ;;  %p2201_p1 = por %p2200_p4, %p2199_p6 }
  0x1f   : > { %p2195_p3 = pneg %p2194_p2 }
  0x21   : > { %p2202_p5 = pnand %p2201_p1, %p2195_p3 }
  0x23   : > { %2205 = shalt.err (!%p2202_p5)
}
  0x24   : > { %s2293_s3 = smov 128   ;;  %s2294_s4 = smov 8  }
  0x25   : > { %2108 = dma.hbm_to_vmem [thread:$0]  (!%p2372_p7), %s2746_s0, 256, %s123_s20, [#allocation3], %s2293_s3, %s2293_s3, %s2294_s4  }
  0x26   : > { %p30_p4 = scmp.ge.s32.totalorder %s28_s22, 2  ;;  %s58_s7 = sadd.s32 1, %s2278_s11 }
  0x27   : > { %p65_p1 = scmp.ne.s32.totalorder %s2278_s11, %s2274_s10  ;;  %p66_p5 = scmp.eq.s32.totalorder %s2290_s14, 0 }
  0x28   : > { %s2767_s22 = smov (%p30_p4, %s28_s22), 0  ;;  %p2114_p9 = scmp.lt.s32.totalorder %s2290_s14, 2 }
  0x29   : > { %p67_p8 = por %p66_p5, %p65_p1  ;;  %s53_s8 = ssub.s32 %s2286_s13, %s2767_s22 }
  0x2a   : > { %s136_s9 = sand.u32 1, %s2278_s11   ;;  %p56_p10 = scmp.eq.s32.totalorder %s53_s8, 0 }
  0x2b   : > { %s1797_s15 = sshll.u32 %s136_s9, 4  ;;  %s1889_s19 = sshll.u32 %s2286_s13, 8 }
  0x2c   : > { %s2405_s23 = scalar_select %p56_p10, %s2278_s11, %s58_s7  }
  0x2d   : > { %s2410_s20 = scalar_lea.hbm %s2747_s1, %s1889_s19  ;;  %s140_s25 = scalar_lea.vmem [#allocation4], %s1797_s15 }
  0x2e   : > { %s149_s26 = sshll.u32 %s140_s25, 4  ;;  %p2412_p7 = pnand %p2114_p9, %p67_p8  ;;  %s2416_s26 = int_to_ptr.vmem [resolvable:$true] %s149_s26 }
  0x2f   : > { %s2418_s28 = scalar_lea.sflag [#allocation5], %s136_s9  ;;  %s2206_s29 = scalar_lea.hbm %s2410_s20, 256 }
  0x30   : > { %p2207_p11 = scmp.ne.s32.totalorder %s2410_s20, %s2206_s29  ;;  %p2208_p12 = pneg %p2412_p7 }
  0x31   : > { %s2211_s4 = scalar_lea.hbm %s2747_s1, 512  ;;  %p2212_p2 = scmp.lt.u32.totalorder %s2410_s20, %s2747_s1 }
  0x32   : > { %p2209_p13 = pnand %p2208_p12, %p2207_p11  ;;  %p2213_p3 = scmp.lt.u32.totalorder %s2211_s4, %s2206_s29 }
  0x33   : > { %p2215_p4 = scmp.lt.u32.totalorder %s2206_s29, %s2410_s20 }
  0x34   : > { %p2210_p0 = pneg %p2209_p13  ;;  %p2214_p6 = por %p2213_p3, %p2212_p2 }
  0x36   : > { %p2216_p1 = por %p2215_p4, %p2214_p6 }
  0x38   : > { %p2217_p5 = pnand %p2216_p1, %p2210_p0 }
  0x3a   : > { %2220 = shalt.err (!%p2217_p5)
}
  0x3b   : > { %s2221_s7 = scalar_lea.vmem %s2416_s26, 256  ;;  %s2295_s8 = smov [#allocation4]  }
  0x3c   : > { %p2222_p8 = scmp.ne.s32.totalorder %s2416_s26, %s2221_s7  ;;  %s2226_s9 = sshll.u32 %s2295_s8, 4  ;;  %s2227_s9 = int_to_ptr.vmem [resolvable:$false] %s2226_s9 }
  0x3d   : > { %s2228_s15 = scalar_lea.vmem %s2227_s9, 512  ;;  %p2229_p11 = scmp.lt.s32.totalorder %s2416_s26, %s2227_s9 }
  0x3e   : > { %p2224_p9 = pnand %p2222_p8, %p2208_p12  ;;  %p2230_p13 = scmp.lt.s32.totalorder %s2228_s15, %s2221_s7 }
  0x40   : > { %p2225_p10 = pneg %p2224_p9  ;;  %p2231_p2 = por %p2230_p13, %p2229_p11 }
  0x42   : > { %p2232_p3 = pnand %p2231_p2, %p2225_p10 }
  0x44   : > { %2235 = shalt.err (!%p2232_p3)
}
  0x45   : > { %s2296_s19 = smov 64   ;;  %s2297_s21 = smov 4  }
  0x46   : > { %2112 = dma.hbm_to_vmem [thread:$0]  (!%p2412_p7), %s2410_s20, 256, %s2416_s26, %s2418_s28, %s2296_s19, %s2296_s19, %s2297_s21  }
  0x47   : > { %p2758_p12 = scmp.ne.s32.totalorder %s2755_s18, 0 }
  0x48   : > { %p2759_p0 = scmp.ne.s32.totalorder (!%p2758_p12), %s2753_s16, 0 }
  0x49   : > { %161 = sbr.rel (%p2758_p12) target bundleno = 619 (0x26b), region = 28 }
  0x50   : > { %2261 = dma.done.wait (%p2759_p0), [#allocation3], 256  }
  0x51   : > { %2263 = vsyncadd (%p2759_p0), [#allocation3], 4294967040  ;;  %s167_s24 = sand.u32 1, %s2274_s10   ;;  %p2760_p6 = scmp.ne.s32.totalorder %s2754_s17, 0 }
  0x52   : > { %s1802_s25 = sshll.u32 %s167_s24, 4  ;;  %s168_s29 = scalar_lea.sflag [#allocation5], %s167_s24 }
  0x53   : > { %s2453_s30 = scalar_lea.vmem [#allocation4], %s1802_s25 }
  0x54   : > { %2265 = dma.done.wait (%p2760_p6), %s168_s29, 256  }
  0x55   : > { %2267 = vsyncadd (%p2760_p6), %s168_s29, 4294967040  ;;  %v2298_v0 = vmov 0.0|0.0   ;;  %vm2299_vm0 = vmmov 0   ;;  %v2300_v1 = vmov 0.0   ;;  %v209_v2 = vld [vmem:[%s2453_s30] sm:$0xf] }
  0x56   : > { %2051 = vmatprep.subr.bf16.mxu0 %v2298_v0  ;;  %1943 = vmatprep.mubr.msk.f32.mxu0 %vm2299_vm0, %v2300_v1  ;;  %s2301_s16 = smov 112   ;;  %s2302_s17 = smov 80   ;;  %v207_v3 = vld [vmem:[#allocation2] sm:$0xff]  ;;  %v208_v4 = vld [vmem:[#allocation2 + $0x8] sm:$0xff]  ;;  %vm210_vm1 = vcmask 130048   ;;  %vm284_vm2 = vcmask 27648  }
  0x57   : > { %2054 = vmatprep.subr.bf16.mxu1 %v2298_v0  ;;  %1950 = vmatprep.mubr.msk.f32.mxu1 %vm2299_vm0, %v2300_v1  ;;  %v1824_v5 = vld [vmem:[%s2453_s30 + $0x4] sm:$0xf]  ;;  %v2467_v6 = vpack.c.bf16 %v208_v4, %v207_v3  ;;  %s2303_s18 = smov 96   ;;  %v1845_v7 = vld [vmem:[%s2453_s30 + $0x8] sm:$0xf]  ;;  %p198_p7 = scmp.lt.s32.totalorder %s2282_s12, 1 }
  0x58   : > { %302 = vrot.lane.b32.xlu0 %v209_v2, %s2301_s16  ;;  %486 = vrot.lane.b32.xlu1 %v209_v2, %s2302_s17  ;;  %v1866_v8 = vld [vmem:[%s2453_s30 + $0xc] sm:$0xf]  ;;  %s2304_s3 = smov 124   ;;  %s2305_s4 = smov 120  }
  0x59   : > { %2053 = vmatpush3.bf16.msra.mxu0 %v2467_v6  ;;  %2056 = vmatpush3.bf16.msra.mxu1 %v2467_v6  ;;  %s2769_s12 = smov (!%p198_p7, %s2282_s12), 1 }
  0x5a   : > { %2057 = vmatprep.subr.bf16.mxu0 %v2298_v0  ;;  %2060 = vmatprep.subr.bf16.mxu1 %v2298_v0  ;;  %s1890_s20 = sshll.u32 %s2769_s12, 8  ;;  %s2306_s12 = smov 116  }
  0x5b   : > { %s2550_s28 = scalar_lea.vmem %s2748_s2, %s1890_s20 }
  0x5c   : > { %394 = vrot.lane.b32.xlu0 %v209_v2, %s2303_s18  ;;  %671 = vrot.lane.b32.xlu1 %v1824_v5, %s2301_s16 }
  0x5d   : > { %1944 = vmatmul.mubr.msk.f32.vlgmr.msra.gmra.mrb[0].mxu0 %vm210_vm1, %v209_v2 }
  0x5e   : > { %2059 = vmatpush3.bf16.msra.mxu0 %v2467_v6  ;;  %1957 = vmatprep.mubr.msk.f32.mxu0 %vm2299_vm0, %v2300_v1 }
  0x5f   : > { %2063 = vmatprep.subr.bf16.mxu0 %v2298_v0 }
  0x60   : > { %763 = vrot.lane.b32.xlu0 %v1824_v5, %s2303_s18  ;;  %855 = vrot.lane.b32.xlu1 %v1824_v5, %s2302_s17 }
  0x64   : > { %1040 = vrot.lane.b32.xlu0 %v1845_v7, %s2301_s16  ;;  %1132 = vrot.lane.b32.xlu1 %v1845_v7, %s2303_s18 }
  0x68   : > { %1224 = vrot.lane.b32.xlu0 %v1845_v7, %s2302_s17  ;;  %1409 = vrot.lane.b32.xlu1 %v1866_v8, %s2301_s16 }
  0x6c   : > { %1501 = vrot.lane.b32.xlu0 %v1866_v8, %s2303_s18  ;;  %1593 = vrot.lane.b32.xlu1 %v1866_v8, %s2302_s17 }
  0xca   : > { %v303_v9 = vpop.permute.xlu0 %302  ;;  %v487_v10 = vpop.permute.xlu1 %486 }
  0xcb   : > { %1951 = vmatmul.mubr.msk.f32.vlgmr.msra.gmra.mrb[0].mxu1 %vm210_vm1, %v303_v9 }
  0xcc   : > { %2062 = vmatpush3.bf16.msra.mxu1 %v2467_v6  ;;  %1964 = vmatprep.mubr.msk.f32.mxu1 %vm2299_vm0, %v2300_v1 }
  0xcd   : > { %2066 = vmatprep.subr.bf16.mxu1 %v2298_v0 }
  0xce   : > { %v395_v11 = vpop.permute.xlu0 %394  ;;  %v672_v12 = vpop.permute.xlu1 %671 }
  0xcf   : > { %1958 = vmatmul.mubr.msk.f32.vlgmr.msra.gmra.mrb[2].mxu0 %vm210_vm1, %v395_v11  ;;  %1965 = vmatmul.mubr.msk.f32.vlgmr.msra.gmra.mrb[2].mxu1 %vm210_vm1, %v487_v10 }
  0xd0   : > { %2065 = vmatpush3.bf16.msra.mxu0 %v2467_v6  ;;  %1971 = vmatprep.mubr.msk.f32.mxu0 %vm2299_vm0, %v2300_v1 }
  0xd1   : > { %2068 = vmatpush3.bf16.msra.mxu1 %v2467_v6  ;;  %1978 = vmatprep.mubr.msk.f32.mxu1 %vm2299_vm0, %v2300_v1 }
  0xd2   : > { %2069 = vmatprep.subr.bf16.mxu0 %v2298_v0  ;;  %2072 = vmatprep.subr.bf16.mxu1 %v2298_v0  ;;  %v764_v13 = vpop.permute.xlu0 %763  ;;  %v856_v14 = vpop.permute.xlu1 %855 }
  0xd3   : > { %1972 = vmatmul.mubr.msk.f32.vlgmr.msra.gmra.mrb[4].mxu0 %vm210_vm1, %v1824_v5 }
  0xd4   : > { %1979 = vmatmul.mubr.msk.f32.vlgmr.msra.gmra.mrb[4].mxu1 %vm210_vm1, %v672_v12  ;;  %2071 = vmatpush3.bf16.msra.mxu0 %v2467_v6 }
  0xd5   : > { %1985 = vmatprep.mubr.msk.f32.mxu0 %vm2299_vm0, %v2300_v1  ;;  %2074 = vmatpush3.bf16.msra.mxu1 %v2467_v6 }
  0xd6   : > { %1992 = vmatprep.mubr.msk.f32.mxu1 %vm2299_vm0, %v2300_v1  ;;  %2075 = vmatprep.subr.bf16.mxu0 %v2298_v0  ;;  %v1041_v15 = vpop.permute.xlu0 %1040  ;;  %v1133_v16 = vpop.permute.xlu1 %1132 }
  0xd7   : > { %1986 = vmatmul.mubr.msk.f32.vlgmr.msra.gmra.mrb[6].mxu0 %vm210_vm1, %v764_v13  ;;  %2078 = vmatprep.subr.bf16.mxu1 %v2298_v0 }
  0xd8   : > { %1993 = vmatmul.mubr.msk.f32.vlgmr.msra.gmra.mrb[6].mxu1 %vm210_vm1, %v856_v14  ;;  %2077 = vmatpush3.bf16.msra.mxu0 %v2467_v6 }
  0xd9   : > { %1999 = vmatprep.mubr.msk.f32.mxu0 %vm2299_vm0, %v2300_v1  ;;  %2080 = vmatpush3.bf16.msra.mxu1 %v2467_v6 }
  0xda   : > { %2006 = vmatprep.mubr.msk.f32.mxu1 %vm2299_vm0, %v2300_v1  ;;  %2081 = vmatprep.subr.bf16.mxu0 %v2298_v0  ;;  %v1225_v17 = vpop.permute.xlu0 %1224  ;;  %v1410_v18 = vpop.permute.xlu1 %1409 }
  0xdb   : > { %2000 = vmatmul.mubr.msk.f32.vlgmr.msra.gmra.mrb[8].mxu0 %vm210_vm1, %v1845_v7  ;;  %2084 = vmatprep.subr.bf16.mxu1 %v2298_v0 }
  0xdc   : > { %2007 = vmatmul.mubr.msk.f32.vlgmr.msra.gmra.mrb[8].mxu1 %vm210_vm1, %v1041_v15  ;;  %2083 = vmatpush3.bf16.msra.mxu0 %v2467_v6 }
  0xdd   : > { %2013 = vmatprep.mubr.msk.f32.mxu0 %vm2299_vm0, %v2300_v1  ;;  %2086 = vmatpush3.bf16.msra.mxu1 %v2467_v6 }
  0xde   : > { %2020 = vmatprep.mubr.msk.f32.mxu1 %vm2299_vm0, %v2300_v1  ;;  %2087 = vmatprep.subr.bf16.mxu0 %v2298_v0  ;;  %v1502_v19 = vpop.permute.xlu0 %1501  ;;  %v1594_v20 = vpop.permute.xlu1 %1593 }
  0xdf   : > { %2014 = vmatmul.mubr.msk.f32.vlgmr.msra.gmra.mrb[10].mxu0 %vm210_vm1, %v1133_v16  ;;  %2090 = vmatprep.subr.bf16.mxu1 %v2298_v0 }
  0xe0   : > { %2021 = vmatmul.mubr.msk.f32.vlgmr.msra.gmra.mrb[10].mxu1 %vm210_vm1, %v1225_v17  ;;  %2089 = vmatpush3.bf16.msra.mxu0 %v2467_v6 }
  0xe1   : > { %2027 = vmatprep.mubr.msk.f32.mxu0 %vm2299_vm0, %v2300_v1  ;;  %2092 = vmatpush3.bf16.msra.mxu1 %v2467_v6 }
  0xe2   : > { %2034 = vmatprep.mubr.msk.f32.mxu1 %vm2299_vm0, %v2300_v1  ;;  %2093 = vmatprep.subr.bf16.mxu0 %v2298_v0 }
  0xe3   : > { %2028 = vmatmul.mubr.msk.f32.vlgmr.msra.gmra.mrb[12].mxu0 %vm210_vm1, %v1866_v8  ;;  %2096 = vmatprep.subr.bf16.mxu1 %v2298_v0 }
  0xe4   : > { %2035 = vmatmul.mubr.msk.f32.vlgmr.msra.gmra.mrb[12].mxu1 %vm210_vm1, %v1410_v18  ;;  %2095 = vmatpush3.bf16.msra.mxu0 %v2467_v6 }
  0xe5   : > { %2041 = vmatprep.mubr.msk.f32.mxu0 %vm2299_vm0, %v2300_v1  ;;  %2098 = vmatpush3.bf16.msra.mxu1 %v2467_v6 }
  0xe6   : > { %2048 = vmatprep.mubr.msk.f32.mxu1 %vm2299_vm0, %v2300_v1 }
  0xe7   : > { %2042 = vmatmul.mubr.msk.f32.vlgmr.msra.gmra.mrb[14].mxu0 %vm210_vm1, %v1502_v19 }
  0xe8   : > { %2049 = vmatmul.mubr.msk.f32.vlgmr.msra.gmra.mrb[14].mxu1 %vm210_vm1, %v1594_v20 }
 0x130   : > { %v280_v21 = vpop.f32.mrb[0].mxu0 }
 0x131   : > { %285 = vst.msk [vmem:[%s2550_s28] sm:$0xf] %vm284_vm2, %v280_v21  ;;  %287 = vrot.lane.b32.xlu0 %v280_v21, %s2304_s3  ;;  %v1945_v22 = vpop.f32.mrb[1].mxu0  ;;  %292 = vrot.lane.b32.xlu1 %v280_v21, %s2305_s4 }
 0x135   : > { %297 = vrot.lane.b32.xlu0 %v280_v21, %s2306_s12 }
 0x19e   : > { %v372_v23 = vpop.f32.mrb[0].mxu1 }
 0x19f   : > { %1810 = vst.msk [vmem:[%s2550_s28 + $0x40] sm:$0xf] %vm284_vm2, %v372_v23  ;;  %v1952_v24 = vpop.f32.mrb[1].mxu1  ;;  %379 = vrot.lane.b32.xlu1 %v372_v23, %s2304_s3  ;;  %384 = vrot.lane.b32.xlu0 %v372_v23, %s2305_s4 }
 0x1a2   : > { %v464_v25 = vpop.f32.mrb[2].mxu0  ;;  %v556_v26 = vpop.f32.mrb[2].mxu1 }
 0x1a3   : > { %1815 = vst.msk [vmem:[%s2550_s28 + $0x80] sm:$0xf] %vm284_vm2, %v464_v25  ;;  %389 = vrot.lane.b32.xlu1 %v372_v23, %s2306_s12  ;;  %471 = vrot.lane.b32.xlu0 %v464_v25, %s2304_s3  ;;  %v1959_v27 = vpop.f32.mrb[3].mxu0  ;;  %1820 = vst.msk [vmem:[%s2550_s28 + $0xc0] sm:$0xf] %vm284_vm2, %v556_v26  ;;  %v1966_v28 = vpop.f32.mrb[3].mxu1 }
 0x1a4   : > { %v288_v29 = vpop.permute.xlu0 %287  ;;  %v293_v30 = vpop.permute.xlu1 %292 }
 0x1a5   : > { %1806 = vst.msk [vmem:[%s2550_s28 + $0x10] sm:$0xf] %vm284_vm2, %v288_v29  ;;  %1807 = vst.msk [vmem:[%s2550_s28 + $0x20] sm:$0xf] %vm284_vm2, %v293_v30 }
 0x1a6   : > { %v649_v31 = vpop.f32.mrb[4].mxu0 }
 0x1a7   : > { %476 = vrot.lane.b32.xlu1 %v464_v25, %s2305_s4  ;;  %481 = vrot.lane.b32.xlu0 %v464_v25, %s2306_s12  ;;  %1826 = vst.msk [vmem:[%s2550_s28 + $0x4] sm:$0xf] %vm284_vm2, %v649_v31  ;;  %v1973_v32 = vpop.f32.mrb[5].mxu0  ;;  %v741_v33 = vpop.f32.mrb[4].mxu1 }
 0x1a8   : > { %1831 = vst.msk [vmem:[%s2550_s28 + $0x44] sm:$0xf] %vm284_vm2, %v741_v33  ;;  %v1980_v34 = vpop.f32.mrb[5].mxu1  ;;  %v298_v35 = vpop.permute.xlu0 %297 }
 0x1a9   : > { %1808 = vst.msk [vmem:[%s2550_s28 + $0x30] sm:$0xf] %vm284_vm2, %v298_v35 }
 0x1aa   : > { %v833_v36 = vpop.f32.mrb[6].mxu0 }
 0x1ab   : > { %563 = vrot.lane.b32.xlu1 %v556_v26, %s2304_s3  ;;  %568 = vrot.lane.b32.xlu0 %v556_v26, %s2305_s4  ;;  %1836 = vst.msk [vmem:[%s2550_s28 + $0x84] sm:$0xf] %vm284_vm2, %v833_v36  ;;  %v1987_v37 = vpop.f32.mrb[7].mxu0  ;;  %v925_v38 = vpop.f32.mrb[6].mxu1 }
 0x1ac   : > { %1841 = vst.msk [vmem:[%s2550_s28 + $0xc4] sm:$0xf] %vm284_vm2, %v925_v38  ;;  %v1994_v39 = vpop.f32.mrb[7].mxu1 }
 0x1ae   : > { %v1018_v40 = vpop.f32.mrb[8].mxu0 }
 0x1af   : > { %573 = vrot.lane.b32.xlu1 %v556_v26, %s2306_s12  ;;  %656 = vrot.lane.b32.xlu0 %v649_v31, %s2304_s3  ;;  %1847 = vst.msk [vmem:[%s2550_s28 + $0x8] sm:$0xf] %vm284_vm2, %v1018_v40  ;;  %v2001_v41 = vpop.f32.mrb[9].mxu0  ;;  %v1110_v42 = vpop.f32.mrb[8].mxu1 }
 0x1b0   : > { %1852 = vst.msk [vmem:[%s2550_s28 + $0x48] sm:$0xf] %vm284_vm2, %v1110_v42  ;;  %v2008_v43 = vpop.f32.mrb[9].mxu1 }
 0x1b2   : > { %v1202_v44 = vpop.f32.mrb[10].mxu0 }
 0x1b3   : > { %661 = vrot.lane.b32.xlu1 %v649_v31, %s2305_s4  ;;  %666 = vrot.lane.b32.xlu0 %v649_v31, %s2306_s12  ;;  %1857 = vst.msk [vmem:[%s2550_s28 + $0x88] sm:$0xf] %vm284_vm2, %v1202_v44  ;;  %v2015_v45 = vpop.f32.mrb[11].mxu0  ;;  %v1294_v46 = vpop.f32.mrb[10].mxu1 }
 0x1b4   : > { %1862 = vst.msk [vmem:[%s2550_s28 + $0xc8] sm:$0xf] %vm284_vm2, %v1294_v46  ;;  %v2022_v47 = vpop.f32.mrb[11].mxu1 }
 0x1b6   : > { %v1387_v48 = vpop.f32.mrb[12].mxu0 }
 0x1b7   : > { %748 = vrot.lane.b32.xlu1 %v741_v33, %s2304_s3  ;;  %753 = vrot.lane.b32.xlu0 %v741_v33, %s2305_s4  ;;  %1868 = vst.msk [vmem:[%s2550_s28 + $0xc] sm:$0xf] %vm284_vm2, %v1387_v48  ;;  %v2029_v49 = vpop.f32.mrb[13].mxu0  ;;  %v1479_v50 = vpop.f32.mrb[12].mxu1 }
 0x1b8   : > { %1873 = vst.msk [vmem:[%s2550_s28 + $0x4c] sm:$0xf] %vm284_vm2, %v1479_v50  ;;  %v2036_v51 = vpop.f32.mrb[13].mxu1 }
 0x1ba   : > { %v1571_v52 = vpop.f32.mrb[14].mxu0 }
 0x1bb   : > { %758 = vrot.lane.b32.xlu1 %v741_v33, %s2306_s12  ;;  %840 = vrot.lane.b32.xlu0 %v833_v36, %s2304_s3  ;;  %1878 = vst.msk [vmem:[%s2550_s28 + $0x8c] sm:$0xf] %vm284_vm2, %v1571_v52  ;;  %v2043_v53 = vpop.f32.mrb[15].mxu0  ;;  %v1663_v54 = vpop.f32.mrb[14].mxu1 }
 0x1bc   : > { %1883 = vst.msk [vmem:[%s2550_s28 + $0xcc] sm:$0xf] %vm284_vm2, %v1663_v54  ;;  %v2050_v55 = vpop.f32.mrb[15].mxu1 }
 0x1bf   : > { %845 = vrot.lane.b32.xlu1 %v833_v36, %s2305_s4  ;;  %850 = vrot.lane.b32.xlu0 %v833_v36, %s2306_s12 }
 0x1c3   : > { %932 = vrot.lane.b32.xlu1 %v925_v38, %s2304_s3  ;;  %937 = vrot.lane.b32.xlu0 %v925_v38, %s2305_s4 }
 0x1c7   : > { %942 = vrot.lane.b32.xlu1 %v925_v38, %s2306_s12  ;;  %1025 = vrot.lane.b32.xlu0 %v1018_v40, %s2304_s3 }
 0x1cb   : > { %1030 = vrot.lane.b32.xlu1 %v1018_v40, %s2305_s4  ;;  %1035 = vrot.lane.b32.xlu0 %v1018_v40, %s2306_s12 }
 0x1cf   : > { %1117 = vrot.lane.b32.xlu1 %v1110_v42, %s2304_s3  ;;  %1122 = vrot.lane.b32.xlu0 %v1110_v42, %s2305_s4 }
 0x1d3   : > { %1127 = vrot.lane.b32.xlu1 %v1110_v42, %s2306_s12  ;;  %1209 = vrot.lane.b32.xlu0 %v1202_v44, %s2304_s3 }
 0x1d7   : > { %1214 = vrot.lane.b32.xlu1 %v1202_v44, %s2305_s4  ;;  %1219 = vrot.lane.b32.xlu0 %v1202_v44, %s2306_s12 }
 0x1db   : > { %1301 = vrot.lane.b32.xlu1 %v1294_v46, %s2304_s3  ;;  %1306 = vrot.lane.b32.xlu0 %v1294_v46, %s2305_s4 }
 0x1df   : > { %1311 = vrot.lane.b32.xlu1 %v1294_v46, %s2306_s12  ;;  %1394 = vrot.lane.b32.xlu0 %v1387_v48, %s2304_s3 }
 0x1e3   : > { %1399 = vrot.lane.b32.xlu1 %v1387_v48, %s2305_s4  ;;  %1404 = vrot.lane.b32.xlu0 %v1387_v48, %s2306_s12 }
 0x1e7   : > { %1486 = vrot.lane.b32.xlu1 %v1479_v50, %s2304_s3  ;;  %1491 = vrot.lane.b32.xlu0 %v1479_v50, %s2305_s4 }
 0x1eb   : > { %1496 = vrot.lane.b32.xlu1 %v1479_v50, %s2306_s12  ;;  %1578 = vrot.lane.b32.xlu0 %v1571_v52, %s2304_s3 }
 0x1ef   : > { %1583 = vrot.lane.b32.xlu1 %v1571_v52, %s2305_s4  ;;  %1588 = vrot.lane.b32.xlu0 %v1571_v52, %s2306_s12 }
 0x1f3   : > { %1670 = vrot.lane.b32.xlu1 %v1663_v54, %s2304_s3  ;;  %1675 = vrot.lane.b32.xlu0 %v1663_v54, %s2305_s4 }
 0x1f7   : > { %1680 = vrot.lane.b32.xlu1 %v1663_v54, %s2306_s12 }
 0x211   : > { %v380_v56 = vpop.permute.xlu1 %379  ;;  %v385_v57 = vpop.permute.xlu0 %384 }
 0x212   : > { %1811 = vst.msk [vmem:[%s2550_s28 + $0x50] sm:$0xf] %vm284_vm2, %v380_v56  ;;  %1812 = vst.msk [vmem:[%s2550_s28 + $0x60] sm:$0xf] %vm284_vm2, %v385_v57 }
 0x215   : > { %v390_v58 = vpop.permute.xlu1 %389  ;;  %v472_v59 = vpop.permute.xlu0 %471 }
 0x216   : > { %1813 = vst.msk [vmem:[%s2550_s28 + $0x70] sm:$0xf] %vm284_vm2, %v390_v58  ;;  %1816 = vst.msk [vmem:[%s2550_s28 + $0x90] sm:$0xf] %vm284_vm2, %v472_v59 }
 0x219   : > { %v477_v60 = vpop.permute.xlu1 %476  ;;  %v482_v61 = vpop.permute.xlu0 %481 }
 0x21a   : > { %1817 = vst.msk [vmem:[%s2550_s28 + $0xa0] sm:$0xf] %vm284_vm2, %v477_v60  ;;  %1818 = vst.msk [vmem:[%s2550_s28 + $0xb0] sm:$0xf] %vm284_vm2, %v482_v61 }
 0x21d   : > { %v564_v62 = vpop.permute.xlu1 %563  ;;  %v569_v63 = vpop.permute.xlu0 %568 }
 0x21e   : > { %1821 = vst.msk [vmem:[%s2550_s28 + $0xd0] sm:$0xf] %vm284_vm2, %v564_v62  ;;  %1822 = vst.msk [vmem:[%s2550_s28 + $0xe0] sm:$0xf] %vm284_vm2, %v569_v63 }
 0x221   : > { %v574_v0 = vpop.permute.xlu1 %573  ;;  %v657_v1 = vpop.permute.xlu0 %656 }
 0x222   : > { %1823 = vst.msk [vmem:[%s2550_s28 + $0xf0] sm:$0xf] %vm284_vm2, %v574_v0  ;;  %1827 = vst.msk [vmem:[%s2550_s28 + $0x14] sm:$0xf] %vm284_vm2, %v657_v1 }
 0x225   : > { %v662_v2 = vpop.permute.xlu1 %661  ;;  %v667_v3 = vpop.permute.xlu0 %666 }
 0x226   : > { %1828 = vst.msk [vmem:[%s2550_s28 + $0x24] sm:$0xf] %vm284_vm2, %v662_v2  ;;  %1829 = vst.msk [vmem:[%s2550_s28 + $0x34] sm:$0xf] %vm284_vm2, %v667_v3 }
 0x229   : > { %v749_v4 = vpop.permute.xlu1 %748  ;;  %v754_v5 = vpop.permute.xlu0 %753 }
 0x22a   : > { %1832 = vst.msk [vmem:[%s2550_s28 + $0x54] sm:$0xf] %vm284_vm2, %v749_v4  ;;  %1833 = vst.msk [vmem:[%s2550_s28 + $0x64] sm:$0xf] %vm284_vm2, %v754_v5 }
 0x22d   : > { %v759_v6 = vpop.permute.xlu1 %758  ;;  %v841_v7 = vpop.permute.xlu0 %840 }
 0x22e   : > { %1834 = vst.msk [vmem:[%s2550_s28 + $0x74] sm:$0xf] %vm284_vm2, %v759_v6  ;;  %1837 = vst.msk [vmem:[%s2550_s28 + $0x94] sm:$0xf] %vm284_vm2, %v841_v7 }
 0x231   : > { %v846_v8 = vpop.permute.xlu1 %845  ;;  %v851_v9 = vpop.permute.xlu0 %850 }
 0x232   : > { %1838 = vst.msk [vmem:[%s2550_s28 + $0xa4] sm:$0xf] %vm284_vm2, %v846_v8  ;;  %1839 = vst.msk [vmem:[%s2550_s28 + $0xb4] sm:$0xf] %vm284_vm2, %v851_v9 }
 0x235   : > { %v933_v10 = vpop.permute.xlu1 %932  ;;  %v938_v11 = vpop.permute.xlu0 %937 }
 0x236   : > { %1842 = vst.msk [vmem:[%s2550_s28 + $0xd4] sm:$0xf] %vm284_vm2, %v933_v10  ;;  %1843 = vst.msk [vmem:[%s2550_s28 + $0xe4] sm:$0xf] %vm284_vm2, %v938_v11 }
 0x239   : > { %v943_v12 = vpop.permute.xlu1 %942  ;;  %v1026_v13 = vpop.permute.xlu0 %1025 }
 0x23a   : > { %1844 = vst.msk [vmem:[%s2550_s28 + $0xf4] sm:$0xf] %vm284_vm2, %v943_v12  ;;  %1848 = vst.msk [vmem:[%s2550_s28 + $0x18] sm:$0xf] %vm284_vm2, %v1026_v13 }
 0x23d   : > { %v1031_v14 = vpop.permute.xlu1 %1030  ;;  %v1036_v15 = vpop.permute.xlu0 %1035 }
 0x23e   : > { %1849 = vst.msk [vmem:[%s2550_s28 + $0x28] sm:$0xf] %vm284_vm2, %v1031_v14  ;;  %1850 = vst.msk [vmem:[%s2550_s28 + $0x38] sm:$0xf] %vm284_vm2, %v1036_v15 }
 0x241   : > { %v1118_v16 = vpop.permute.xlu1 %1117  ;;  %v1123_v17 = vpop.permute.xlu0 %1122 }
 0x242   : > { %1853 = vst.msk [vmem:[%s2550_s28 + $0x58] sm:$0xf] %vm284_vm2, %v1118_v16  ;;  %1854 = vst.msk [vmem:[%s2550_s28 + $0x68] sm:$0xf] %vm284_vm2, %v1123_v17 }
 0x245   : > { %v1128_v18 = vpop.permute.xlu1 %1127  ;;  %v1210_v19 = vpop.permute.xlu0 %1209 }
 0x246   : > { %1855 = vst.msk [vmem:[%s2550_s28 + $0x78] sm:$0xf] %vm284_vm2, %v1128_v18  ;;  %1858 = vst.msk [vmem:[%s2550_s28 + $0x98] sm:$0xf] %vm284_vm2, %v1210_v19 }
 0x249   : > { %v1215_v20 = vpop.permute.xlu1 %1214  ;;  %v1220_v21 = vpop.permute.xlu0 %1219 }
 0x24a   : > { %1859 = vst.msk [vmem:[%s2550_s28 + $0xa8] sm:$0xf] %vm284_vm2, %v1215_v20  ;;  %1860 = vst.msk [vmem:[%s2550_s28 + $0xb8] sm:$0xf] %vm284_vm2, %v1220_v21 }
 0x24d   : > { %v1302_v22 = vpop.permute.xlu1 %1301  ;;  %v1307_v23 = vpop.permute.xlu0 %1306 }
 0x24e   : > { %1863 = vst.msk [vmem:[%s2550_s28 + $0xd8] sm:$0xf] %vm284_vm2, %v1302_v22  ;;  %1864 = vst.msk [vmem:[%s2550_s28 + $0xe8] sm:$0xf] %vm284_vm2, %v1307_v23 }
 0x251   : > { %v1312_v24 = vpop.permute.xlu1 %1311  ;;  %v1395_v25 = vpop.permute.xlu0 %1394 }
 0x252   : > { %1865 = vst.msk [vmem:[%s2550_s28 + $0xf8] sm:$0xf] %vm284_vm2, %v1312_v24  ;;  %1869 = vst.msk [vmem:[%s2550_s28 + $0x1c] sm:$0xf] %vm284_vm2, %v1395_v25 }
 0x255   : > { %v1400_v26 = vpop.permute.xlu1 %1399  ;;  %v1405_v27 = vpop.permute.xlu0 %1404 }
 0x256   : > { %1870 = vst.msk [vmem:[%s2550_s28 + $0x2c] sm:$0xf] %vm284_vm2, %v1400_v26  ;;  %1871 = vst.msk [vmem:[%s2550_s28 + $0x3c] sm:$0xf] %vm284_vm2, %v1405_v27 }
 0x259   : > { %v1487_v28 = vpop.permute.xlu1 %1486  ;;  %v1492_v29 = vpop.permute.xlu0 %1491 }
 0x25a   : > { %1874 = vst.msk [vmem:[%s2550_s28 + $0x5c] sm:$0xf] %vm284_vm2, %v1487_v28  ;;  %1875 = vst.msk [vmem:[%s2550_s28 + $0x6c] sm:$0xf] %vm284_vm2, %v1492_v29 }
 0x25d   : > { %v1497_v30 = vpop.permute.xlu1 %1496  ;;  %v1579_v31 = vpop.permute.xlu0 %1578 }
 0x25e   : > { %1876 = vst.msk [vmem:[%s2550_s28 + $0x7c] sm:$0xf] %vm284_vm2, %v1497_v30  ;;  %1879 = vst.msk [vmem:[%s2550_s28 + $0x9c] sm:$0xf] %vm284_vm2, %v1579_v31 }
 0x261   : > { %v1584_v32 = vpop.permute.xlu1 %1583  ;;  %v1589_v33 = vpop.permute.xlu0 %1588 }
 0x262   : > { %1880 = vst.msk [vmem:[%s2550_s28 + $0xac] sm:$0xf] %vm284_vm2, %v1584_v32  ;;  %1881 = vst.msk [vmem:[%s2550_s28 + $0xbc] sm:$0xf] %vm284_vm2, %v1589_v33 }
 0x265   : > { %v1671_v34 = vpop.permute.xlu1 %1670  ;;  %v1676_v35 = vpop.permute.xlu0 %1675 }
 0x266   : > { %1884 = vst.msk [vmem:[%s2550_s28 + $0xdc] sm:$0xf] %vm284_vm2, %v1671_v34  ;;  %1885 = vst.msk [vmem:[%s2550_s28 + $0xec] sm:$0xf] %vm284_vm2, %v1676_v35 }
 0x269   : > { %v1681_v36 = vpop.permute.xlu1 %1680 }
 0x26a   : > { %1886 = vst.msk [vmem:[%s2550_s28 + $0xfc] sm:$0xf] %vm284_vm2, %v1681_v36 }
 0x26b PF: > { %s16_s14 = sadd.s32 1, %s2290_s14   ;;  %s2761_s9 = smov %s2274_s10 }
 0x26c   : > { %p13_p4 = scmp.ge.s32.totalorder %s16_s14, 4   ;;  %s2762_s10 = smov %s2278_s11 }
 0x26d   : > { %s2763_s11 = smov %s2405_s23  ;;  %s2764_s12 = smov %s2286_s13 }
 0x26e   : > { %s2765_s13 = smov %s2767_s22  ;;  %15 = sbr.rel (!%p13_p4) target bundleno = 5 (0x5), region = 139 }
 0x275   :  { %1715 = vsyncpa [#allocation3], 1 }
 0x276   :  { %1717 = vsyncpa [#allocation3 + $0x1], 1 }
 0x277   :  { %1718 = vsyncpa [#allocation5], 1 }
 0x278   :  { %1720 = vsyncpa [#allocation5 + $0x1], 1 }

</bundles_post_ra>
